<compile_context>
chip_gen: v7x
topology: tpu7x:2x2x1
jax: 0.10.0
libtpu: 0.0.40
codegen_flags: <defaults>
</compile_context>

<pallas_src>
import functools

import jax
import jax.numpy as jnp
from jax.experimental import pallas as pl
from jax.experimental.pallas import tpu as pltpu


# ---------------------------------------------------------------------------
# Plain-JAX glue: padding + constant windowed-DFT matrix (both O(L) / O(n_fft^2)).
# ---------------------------------------------------------------------------
def make_windowed_dft(n_fft: int) -> jnp.ndarray:
    """(n_fft, n_fft) real matrix D s.t. frames @ D == torch.stft(..., normalized=True)
    restricted to bins 1..n_fft//2 with channels interleaved [re_k, im_k]
    (== the permute + flatten done in EmbeddingSTFT.forward)."""
    n = jnp.arange(n_fft, dtype=jnp.float32)
    win = 0.5 * (1.0 - jnp.cos(2.0 * jnp.pi * n / n_fft))          # hann (periodic)
    k = jnp.arange(1, n_fft // 2 + 1, dtype=jnp.float32)           # freq bins 1..n_fft/2
    ang = 2.0 * jnp.pi * n[:, None] * k[None, :] / n_fft           # (n_fft, n_fft//2)
    re = jnp.cos(ang)
    im = -jnp.sin(ang)
    d = jnp.stack([re, im], axis=-1).reshape(n_fft, n_fft)         # col = 2*(k-1)+{re,im}
    return (d * win[:, None]) / jnp.sqrt(jnp.float32(n_fft))       # normalized=True


def pad_waveform(x, *, window_size, hop_size):
    """F.pad(zeros, hop//2 each side) + torch.stft center=True reflect pad (n_fft//2)."""
    pad = hop_size // 2
    x_p = jnp.pad(x.astype(jnp.float32), ((0, 0), (pad, pad)))
    return jnp.pad(x_p, ((0, 0), (window_size // 2, window_size // 2)), mode="reflect")


def extract_frames(x, *, wave_length, window_size, hop_size):
    """Reference-only framing (frames 1..T of the centered STFT)."""
    T = wave_length // hop_size
    x_r = pad_waveform(x, window_size=window_size, hop_size=hop_size)
    starts = (jnp.arange(T) + 1) * hop_size                         # drop frame 0 / last
    idx = starts[:, None] + jnp.arange(window_size)[None, :]        # (T, n_fft)
    return x_r[:, idx]                                              # (N, T, n_fft)


# ---------------------------------------------------------------------------
# Pallas kernel: in-kernel framing + fused STFT/conv matmul + LN(T) + PReLU.
# ---------------------------------------------------------------------------
def _emb_stft_kernel(wav_ref, w_ref, gamma_ref, beta_ref, alpha_ref, out_ref, fr_ref,
                     *, t_frames, hop_size, n_fft):
    bn = fr_ref.shape[0]
    # --- framing: T strided VMEM->VMEM copies (frames never touch HBM) -------------
    for t in range(t_frames):                                       # static unroll, T small
        s = (t + 1) * hop_size                                      # frame t+1 of torch.stft
        fr_ref[:, pl.ds(t, 1), :] = wav_ref[:, :, pl.ds(s, n_fft)]
    # --- fused (windowed DFT @ conv1x1 weight^T) matmul: bf16 in, f32 accumulate ----
    frames = fr_ref[...].reshape(bn * t_frames, n_fft).astype(jnp.bfloat16)
    y = jnp.dot(frames, w_ref[...], preferred_element_type=jnp.float32)   # (Bn*T, F)
    y = y.reshape(bn, t_frames, w_ref.shape[1])                           # (Bn, T, F)
    # (conv bias omitted: constant over T, cancels exactly in LayerNorm(T))
    # --- LayerNorm over the time axis T, eps = 1e-5 ---------------------------------
    mean = jnp.mean(y, axis=1, keepdims=True)                             # (Bn, 1, F)
    var = jnp.mean((y - mean) ** 2, axis=1, keepdims=True)
    yn = (y - mean) * jax.lax.rsqrt(var + 1e-5)
    yn = yn * gamma_ref[...] + beta_ref[...]                              # (1, T, 1) bcast
    # --- PReLU with per-output-channel slope -----------------------------------------
    out_ref[...] = jnp.where(yn > 0, yn, alpha_ref[...] * yn)             # (1, 1, F) bcast


def _pick_block_batch(n_batch, t_frames, target_rows=256):
    """Batch rows per grid step: fill the MXU M dim (~256 rows on v6e/v7x) but keep
    >= 2 grid steps when the batch allows (pipeline overlap / megacore), and divide N."""
    bn = max(1, min(n_batch, target_rows // max(1, t_frames)))
    while bn > 1 and n_batch // bn < 2:
        bn -= 1
    while n_batch % bn != 0:
        bn -= 1
    return bn


def embedding_stft_forward(x, params, *, wave_length, window_size, hop_size,
                           num_features):
    """Pallas implementation of EmbeddingSTFT.forward.  x: (N, wave_length) f32.
    Returns (N, num_features, T) to match the PyTorch output layout."""
    N, L = x.shape
    assert L == wave_length
    n_fft = window_size
    T = wave_length // hop_size
    F = num_features

    # Cheap O(L) zero/reflect padding stays in XLA; the overlapped framing is in-kernel.
    wav = pad_waveform(x, window_size=window_size, hop_size=hop_size)[:, None, :]  # (N,1,Lp)
    Lp = wav.shape[-1]

    # Fuse windowed-DFT and 1x1 conv into a single weight (exact: both are linear).
    dft = make_windowed_dft(n_fft)                                               # (n_fft, n_fft)
    w_fused = jnp.dot(dft, params["w_conv"].T.astype(jnp.float32)).astype(jnp.bfloat16)
    # conv bias intentionally not passed: LayerNorm over T removes it exactly.

    gamma = params["gamma"].astype(jnp.float32).reshape(1, T, 1)
    beta = params["beta"].astype(jnp.float32).reshape(1, T, 1)
    alpha = params["alpha"].astype(jnp.float32).reshape(1, 1, F)

    Bn = _pick_block_batch(N, T)
    grid = (N // Bn,)

    # VMEM per step (double-buffered wav/out blocks + weight + scratch) is only a few
    # hundred KiB even at the default module config, far below the 32 MiB scoped default
    # on v5e/v6e/v7x; re-derive (and set vmem_limit_bytes) if Bn/T are scaled up on v7x.
    kernel = functools.partial(_emb_stft_kernel, t_frames=T, hop_size=hop_size, n_fft=n_fft)

    out_tf = pl.pallas_call(
        kernel,
        out_shape=jax.ShapeDtypeStruct((N, T, F), jnp.float32),
        grid_spec=pltpu.PrefetchScalarGridSpec(
            num_scalar_prefetch=0,
            grid=grid,
            in_specs=[
                pl.BlockSpec((Bn, 1, Lp), lambda b: (b, 0, 0)),      # padded waveform
                pl.BlockSpec((n_fft, F), lambda b: (0, 0)),          # fused DFT @ conv weight
                pl.BlockSpec((1, T, 1), lambda b: (0, 0, 0)),        # LN gamma
                pl.BlockSpec((1, T, 1), lambda b: (0, 0, 0)),        # LN beta
                pl.BlockSpec((1, 1, F), lambda b: (0, 0, 0)),        # PReLU alpha
            ],
            out_specs=pl.BlockSpec((Bn, T, F), lambda b: (b, 0, 0)), # lane-dense F output
            scratch_shapes=[pltpu.VMEM((Bn, T, n_fft), jnp.float32)],
        ),
        compiler_params=pltpu.CompilerParams(dimension_semantics=("parallel",)),
    )(wav, w_fused, gamma, beta, alpha)

    # Keep the kernel output channels-last; the NCL transpose is a single XLA pass
    # (emitting (N, F, T) directly would produce T-lane masked partial stores).
    return jnp.transpose(out_tf, (0, 2, 1))                          # (N, F, T)


# ---------------------------------------------------------------------------
# Pure-JAX f32 reference (mirror of the PyTorch forward, incl. the conv bias).
# ---------------------------------------------------------------------------
def embedding_stft_reference(x, params, *, wave_length, window_size, hop_size,
                             num_features):
    frames = extract_frames(x, wave_length=wave_length,
                            window_size=window_size, hop_size=hop_size)
    dft = make_windowed_dft(window_size)
    spec = jnp.einsum("ntm,mc->ntc", frames, dft)                            # (N, T, C)
    y = jnp.einsum("ntc,fc->ntf", spec, params["w_conv"]) + params["b_conv"][None, None, :]
    mean = jnp.mean(y, axis=1, keepdims=True)                                # over T
    var = jnp.mean((y - mean) ** 2, axis=1, keepdims=True)
    yn = (y - mean) / jnp.sqrt(var + 1e-5)
    yn = yn * params["gamma"][None, :, None] + params["beta"][None, :, None]
    out = jnp.where(yn > 0, yn, params["alpha"][None, None, :] * yn)
    return jnp.transpose(out, (0, 2, 1))                                     # (N, F, T)


if __name__ == "__main__":
    # Small config consistent with the module: T = wave_length // hop_size,
    # conv in_channels = window_size, out_channels = num_features.
    N = 8
    wave_length = 2048
    window_size = 256          # n_fft
    hop_size = 128
    num_features = 256
    T = wave_length // hop_size    # 16
    C = window_size                # 256

    key = jax.random.PRNGKey(0)
    kx, kw, kb, kg, kbe, ka = jax.random.split(key, 6)

    x = jax.random.normal(kx, (N, wave_length), dtype=jnp.float32)

    params = {
        "w_conv": 0.05 * jax.random.normal(kw, (num_features, C), dtype=jnp.float32),
        "b_conv": 0.05 * jax.random.normal(kb, (num_features,), dtype=jnp.float32),
        "gamma": 1.0 + 0.1 * jax.random.normal(kg, (T,), dtype=jnp.float32),
        "beta": 0.1 * jax.random.normal(kbe, (T,), dtype=jnp.float32),
        "alpha": 0.25 + 0.05 * jax.random.normal(ka, (num_features,), dtype=jnp.float32),
    }

    out = embedding_stft_forward(
        x, params, wave_length=wave_length, window_size=window_size,
        hop_size=hop_size, num_features=num_features)
    out = jax.block_until_ready(out)

    ref = embedding_stft_reference(
        x, params, wave_length=wave_length, window_size=window_size,
        hop_size=hop_size, num_features=num_features)
    ref = jax.block_until_ready(ref)

    assert out.shape == (N, num_features, T), out.shape
    assert bool(jnp.all(jnp.isfinite(out)))
    max_err = float(jnp.max(jnp.abs(out - ref)))
    mean_err = float(jnp.mean(jnp.abs(out - ref)))
    # bf16 MXU inputs vs. an all-f32 reference; outputs are LayerNorm-scaled (O(1)).
    assert max_err < 4e-2, (max_err, mean_err)
    assert mean_err < 1e-2, (max_err, mean_err)

    print("KERNEL_OK")
</pallas_src>

<mosaic_0001>
module attributes {stable_mosaic.version = 11 : i64} {
  func.func @_emb_stft_kernel(%arg0: i32, %arg1: memref<4x1x2432xf32, #tpu.memory_space<vmem>>, %arg2: memref<256x256xbf16, #tpu.memory_space<vmem>>, %arg3: memref<1x16x1xf32, #tpu.memory_space<vmem>>, %arg4: memref<1x16x1xf32, #tpu.memory_space<vmem>>, %arg5: memref<1x1x256xf32, #tpu.memory_space<vmem>>, %arg6: memref<4x16x256xf32, #tpu.memory_space<vmem>>, %arg7: memref<4x16x256xf32, #tpu.memory_space<vmem>>) attributes {dimension_semantics = [#tpu.dimension_semantics<parallel>], iteration_bounds = array<i64: 2>, scalar_prefetch = 0 : i64, scratch_operands = 1 : i64, tpu.core_type = #tpu.core_type<tc>, window_params = [{transform_indices = @transform_0, window_bounds = array<i64: 4, 1, 2432>}, {pipeline_mode = #tpu.pipeline_mode<synchronous>, transform_indices = @transform_1, window_bounds = array<i64: 256, 256>}, {pipeline_mode = #tpu.pipeline_mode<synchronous>, transform_indices = @transform_2, window_bounds = array<i64: 1, 16, 1>}, {pipeline_mode = #tpu.pipeline_mode<synchronous>, transform_indices = @transform_3, window_bounds = array<i64: 1, 16, 1>}, {pipeline_mode = #tpu.pipeline_mode<synchronous>, transform_indices = @transform_4, window_bounds = array<i64: 1, 1, 256>}, {transform_indices = @transform_5, window_bounds = array<i64: 4, 16, 256>}]} {
    %c0 = arith.constant 0 : index
    %c0_0 = arith.constant 0 : index
    %c128 = arith.constant 128 : index
    %0 = vector.load %arg1[%c0, %c0_0, %c128] : memref<4x1x2432xf32, #tpu.memory_space<vmem>>, vector<4x1x256xf32>
    %c0_1 = arith.constant 0 : index
    %c0_2 = arith.constant 0 : index
    %c0_3 = arith.constant 0 : index
    %1 = vector.load %arg7[%c0_1, %c0_2, %c0_3] : memref<4x16x256xf32, #tpu.memory_space<vmem>>, vector<4x1x256xf32>
    tpu.vector_store %arg7[%c0_1, %c0_2, %c0_3], %0 {strides = array<i32>} : memref<4x16x256xf32, #tpu.memory_space<vmem>>, vector<4x1x256xf32>,
    %c0_4 = arith.constant 0 : index
    %c0_5 = arith.constant 0 : index
    %c256 = arith.constant 256 : index
    %2 = vector.load %arg1[%c0_4, %c0_5, %c256] : memref<4x1x2432xf32, #tpu.memory_space<vmem>>, vector<4x1x256xf32>
    %c0_6 = arith.constant 0 : index
    %c1 = arith.constant 1 : index
    %c0_7 = arith.constant 0 : index
    %3 = vector.load %arg7[%c0_6, %c1, %c0_7] : memref<4x16x256xf32, #tpu.memory_space<vmem>>, vector<4x1x256xf32>
    tpu.vector_store %arg7[%c0_6, %c1, %c0_7], %2 {strides = array<i32>} : memref<4x16x256xf32, #tpu.memory_space<vmem>>, vector<4x1x256xf32>,
    %c0_8 = arith.constant 0 : index
    %c0_9 = arith.constant 0 : index
    %c384 = arith.constant 384 : index
    %4 = vector.load %arg1[%c0_8, %c0_9, %c384] : memref<4x1x2432xf32, #tpu.memory_space<vmem>>, vector<4x1x256xf32>
    %c0_10 = arith.constant 0 : index
    %c2 = arith.constant 2 : index
    %c0_11 = arith.constant 0 : index
    %5 = vector.load %arg7[%c0_10, %c2, %c0_11] : memref<4x16x256xf32, #tpu.memory_space<vmem>>, vector<4x1x256xf32>
    tpu.vector_store %arg7[%c0_10, %c2, %c0_11], %4 {strides = array<i32>} : memref<4x16x256xf32, #tpu.memory_space<vmem>>, vector<4x1x256xf32>,
    %c0_12 = arith.constant 0 : index
    %c0_13 = arith.constant 0 : index
    %c512 = arith.constant 512 : index
    %6 = vector.load %arg1[%c0_12, %c0_13, %c512] : memref<4x1x2432xf32, #tpu.memory_space<vmem>>, vector<4x1x256xf32>
    %c0_14 = arith.constant 0 : index
    %c3 = arith.constant 3 : index
    %c0_15 = arith.constant 0 : index
    %7 = vector.load %arg7[%c0_14, %c3, %c0_15] : memref<4x16x256xf32, #tpu.memory_space<vmem>>, vector<4x1x256xf32>
    tpu.vector_store %arg7[%c0_14, %c3, %c0_15], %6 {strides = array<i32>} : memref<4x16x256xf32, #tpu.memory_space<vmem>>, vector<4x1x256xf32>,
    %c0_16 = arith.constant 0 : index
    %c0_17 = arith.constant 0 : index
    %c640 = arith.constant 640 : index
    %8 = vector.load %arg1[%c0_16, %c0_17, %c640] : memref<4x1x2432xf32, #tpu.memory_space<vmem>>, vector<4x1x256xf32>
    %c0_18 = arith.constant 0 : index
    %c4 = arith.constant 4 : index
    %c0_19 = arith.constant 0 : index
    %9 = vector.load %arg7[%c0_18, %c4, %c0_19] : memref<4x16x256xf32, #tpu.memory_space<vmem>>, vector<4x1x256xf32>
    tpu.vector_store %arg7[%c0_18, %c4, %c0_19], %8 {strides = array<i32>} : memref<4x16x256xf32, #tpu.memory_space<vmem>>, vector<4x1x256xf32>,
    %c0_20 = arith.constant 0 : index
    %c0_21 = arith.constant 0 : index
    %c768 = arith.constant 768 : index
    %10 = vector.load %arg1[%c0_20, %c0_21, %c768] : memref<4x1x2432xf32, #tpu.memory_space<vmem>>, vector<4x1x256xf32>
    %c0_22 = arith.constant 0 : index
    %c5 = arith.constant 5 : index
    %c0_23 = arith.constant 0 : index
    %11 = vector.load %arg7[%c0_22, %c5, %c0_23] : memref<4x16x256xf32, #tpu.memory_space<vmem>>, vector<4x1x256xf32>
    tpu.vector_store %arg7[%c0_22, %c5, %c0_23], %10 {strides = array<i32>} : memref<4x16x256xf32, #tpu.memory_space<vmem>>, vector<4x1x256xf32>,
    %c0_24 = arith.constant 0 : index
    %c0_25 = arith.constant 0 : index
    %c896 = arith.constant 896 : index
    %12 = vector.load %arg1[%c0_24, %c0_25, %c896] : memref<4x1x2432xf32, #tpu.memory_space<vmem>>, vector<4x1x256xf32>
    %c0_26 = arith.constant 0 : index
    %c6 = arith.constant 6 : index
    %c0_27 = arith.constant 0 : index
    %13 = vector.load %arg7[%c0_26, %c6, %c0_27] : memref<4x16x256xf32, #tpu.memory_space<vmem>>, vector<4x1x256xf32>
    tpu.vector_store %arg7[%c0_26, %c6, %c0_27], %12 {strides = array<i32>} : memref<4x16x256xf32, #tpu.memory_space<vmem>>, vector<4x1x256xf32>,
    %c0_28 = arith.constant 0 : index
    %c0_29 = arith.constant 0 : index
    %c1024 = arith.constant 1024 : index
    %14 = vector.load %arg1[%c0_28, %c0_29, %c1024] : memref<4x1x2432xf32, #tpu.memory_space<vmem>>, vector<4x1x256xf32>
    %c0_30 = arith.constant 0 : index
    %c7 = arith.constant 7 : index
    %c0_31 = arith.constant 0 : index
    %15 = vector.load %arg7[%c0_30, %c7, %c0_31] : memref<4x16x256xf32, #tpu.memory_space<vmem>>, vector<4x1x256xf32>
    tpu.vector_store %arg7[%c0_30, %c7, %c0_31], %14 {strides = array<i32>} : memref<4x16x256xf32, #tpu.memory_space<vmem>>, vector<4x1x256xf32>,
    %c0_32 = arith.constant 0 : index
    %c0_33 = arith.constant 0 : index
    %c1152 = arith.constant 1152 : index
    %16 = vector.load %arg1[%c0_32, %c0_33, %c1152] : memref<4x1x2432xf32, #tpu.memory_space<vmem>>, vector<4x1x256xf32>
    %c0_34 = arith.constant 0 : index
    %c8 = arith.constant 8 : index
    %c0_35 = arith.constant 0 : index
    %17 = vector.load %arg7[%c0_34, %c8, %c0_35] : memref<4x16x256xf32, #tpu.memory_space<vmem>>, vector<4x1x256xf32>
    tpu.vector_store %arg7[%c0_34, %c8, %c0_35], %16 {strides = array<i32>} : memref<4x16x256xf32, #tpu.memory_space<vmem>>, vector<4x1x256xf32>,
    %c0_36 = arith.constant 0 : index
    %c0_37 = arith.constant 0 : index
    %c1280 = arith.constant 1280 : index
    %18 = vector.load %arg1[%c0_36, %c0_37, %c1280] : memref<4x1x2432xf32, #tpu.memory_space<vmem>>, vector<4x1x256xf32>
    %c0_38 = arith.constant 0 : index
    %c9 = arith.constant 9 : index
    %c0_39 = arith.constant 0 : index
    %19 = vector.load %arg7[%c0_38, %c9, %c0_39] : memref<4x16x256xf32, #tpu.memory_space<vmem>>, vector<4x1x256xf32>
    tpu.vector_store %arg7[%c0_38, %c9, %c0_39], %18 {strides = array<i32>} : memref<4x16x256xf32, #tpu.memory_space<vmem>>, vector<4x1x256xf32>,
    %c0_40 = arith.constant 0 : index
    %c0_41 = arith.constant 0 : index
    %c1408 = arith.constant 1408 : index
    %20 = vector.load %arg1[%c0_40, %c0_41, %c1408] : memref<4x1x2432xf32, #tpu.memory_space<vmem>>, vector<4x1x256xf32>
    %c0_42 = arith.constant 0 : index
    %c10 = arith.constant 10 : index
    %c0_43 = arith.constant 0 : index
    %21 = vector.load %arg7[%c0_42, %c10, %c0_43] : memref<4x16x256xf32, #tpu.memory_space<vmem>>, vector<4x1x256xf32>
    tpu.vector_store %arg7[%c0_42, %c10, %c0_43], %20 {strides = array<i32>} : memref<4x16x256xf32, #tpu.memory_space<vmem>>, vector<4x1x256xf32>,
    %c0_44 = arith.constant 0 : index
    %c0_45 = arith.constant 0 : index
    %c1536 = arith.constant 1536 : index
    %22 = vector.load %arg1[%c0_44, %c0_45, %c1536] : memref<4x1x2432xf32, #tpu.memory_space<vmem>>, vector<4x1x256xf32>
    %c0_46 = arith.constant 0 : index
    %c11 = arith.constant 11 : index
    %c0_47 = arith.constant 0 : index
    %23 = vector.load %arg7[%c0_46, %c11, %c0_47] : memref<4x16x256xf32, #tpu.memory_space<vmem>>, vector<4x1x256xf32>
    tpu.vector_store %arg7[%c0_46, %c11, %c0_47], %22 {strides = array<i32>} : memref<4x16x256xf32, #tpu.memory_space<vmem>>, vector<4x1x256xf32>,
    %c0_48 = arith.constant 0 : index
    %c0_49 = arith.constant 0 : index
    %c1664 = arith.constant 1664 : index
    %24 = vector.load %arg1[%c0_48, %c0_49, %c1664] : memref<4x1x2432xf32, #tpu.memory_space<vmem>>, vector<4x1x256xf32>
    %c0_50 = arith.constant 0 : index
    %c12 = arith.constant 12 : index
    %c0_51 = arith.constant 0 : index
    %25 = vector.load %arg7[%c0_50, %c12, %c0_51] : memref<4x16x256xf32, #tpu.memory_space<vmem>>, vector<4x1x256xf32>
    tpu.vector_store %arg7[%c0_50, %c12, %c0_51], %24 {strides = array<i32>} : memref<4x16x256xf32, #tpu.memory_space<vmem>>, vector<4x1x256xf32>,
    %c0_52 = arith.constant 0 : index
    %c0_53 = arith.constant 0 : index
    %c1792 = arith.constant 1792 : index
    %26 = vector.load %arg1[%c0_52, %c0_53, %c1792] : memref<4x1x2432xf32, #tpu.memory_space<vmem>>, vector<4x1x256xf32>
    %c0_54 = arith.constant 0 : index
    %c13 = arith.constant 13 : index
    %c0_55 = arith.constant 0 : index
    %27 = vector.load %arg7[%c0_54, %c13, %c0_55] : memref<4x16x256xf32, #tpu.memory_space<vmem>>, vector<4x1x256xf32>
    tpu.vector_store %arg7[%c0_54, %c13, %c0_55], %26 {strides = array<i32>} : memref<4x16x256xf32, #tpu.memory_space<vmem>>, vector<4x1x256xf32>,
    %c0_56 = arith.constant 0 : index
    %c0_57 = arith.constant 0 : index
    %c1920 = arith.constant 1920 : index
    %28 = vector.load %arg1[%c0_56, %c0_57, %c1920] : memref<4x1x2432xf32, #tpu.memory_space<vmem>>, vector<4x1x256xf32>
    %c0_58 = arith.constant 0 : index
    %c14 = arith.constant 14 : index
    %c0_59 = arith.constant 0 : index
    %29 = vector.load %arg7[%c0_58, %c14, %c0_59] : memref<4x16x256xf32, #tpu.memory_space<vmem>>, vector<4x1x256xf32>
    tpu.vector_store %arg7[%c0_58, %c14, %c0_59], %28 {strides = array<i32>} : memref<4x16x256xf32, #tpu.memory_space<vmem>>, vector<4x1x256xf32>,
    %c0_60 = arith.constant 0 : index
    %c0_61 = arith.constant 0 : index
    %c2048 = arith.constant 2048 : index
    %30 = vector.load %arg1[%c0_60, %c0_61, %c2048] : memref<4x1x2432xf32, #tpu.memory_space<vmem>>, vector<4x1x256xf32>
    %c0_62 = arith.constant 0 : index
    %c15 = arith.constant 15 : index
    %c0_63 = arith.constant 0 : index
    %31 = vector.load %arg7[%c0_62, %c15, %c0_63] : memref<4x16x256xf32, #tpu.memory_space<vmem>>, vector<4x1x256xf32>
    tpu.vector_store %arg7[%c0_62, %c15, %c0_63], %30 {strides = array<i32>} : memref<4x16x256xf32, #tpu.memory_space<vmem>>, vector<4x1x256xf32>,
    %c0_64 = arith.constant 0 : index
    %c0_65 = arith.constant 0 : index
    %c0_66 = arith.constant 0 : index
    %32 = vector.load %arg7[%c0_64, %c0_65, %c0_66] : memref<4x16x256xf32, #tpu.memory_space<vmem>>, vector<4x16x256xf32>
    %33 = vector.shape_cast %32 : vector<4x16x256xf32> to vector<64x256xf32>
    %34 = arith.truncf %33 : vector<64x256xf32> to vector<64x256xbf16>
    %c0_67 = arith.constant 0 : index
    %c0_68 = arith.constant 0 : index
    %35 = vector.load %arg2[%c0_67, %c0_68] : memref<256x256xbf16, #tpu.memory_space<vmem>>, vector<256x256xbf16>
    %cst = arith.constant dense<0.000000e+00> : vector<64x256xf32>
    %36 = tpu.matmul %34, %35, %cst {dimension_numbers = #tpu.dot_dimension_numbers<[1], [0], [0], [1], [0, 0, 1, 1], [], []>} : vector<64x256xbf16>, vector<256x256xbf16>, vector<64x256xf32> -> vector<64x256xf32>
    %37 = vector.shape_cast %36 : vector<64x256xf32> to vector<4x16x256xf32>
    %cst_69 = arith.constant dense<0.000000e+00> : vector<4x256xf32>
    %38 = vector.multi_reduction <add>, %37, %cst_69 [1] : vector<4x16x256xf32> to vector<4x256xf32>
    %39 = vector.shape_cast %38 : vector<4x256xf32> to vector<4x1x256xf32>
    %cst_70 = arith.constant 1.600000e+01 : f32
    %40 = vector.broadcast %cst_70 : f32 to vector<4x1x256xf32>
    %41 = arith.divf %39, %40 : vector<4x1x256xf32>
    %42 = vector.broadcast %41 : vector<4x1x256xf32> to vector<4x16x256xf32>
    %43 = arith.subf %37, %42 : vector<4x16x256xf32>
    %44 = arith.mulf %43, %43 : vector<4x16x256xf32>
    %cst_71 = arith.constant dense<0.000000e+00> : vector<4x256xf32>
    %45 = vector.multi_reduction <add>, %44, %cst_71 [1] : vector<4x16x256xf32> to vector<4x256xf32>
    %46 = vector.shape_cast %45 : vector<4x256xf32> to vector<4x1x256xf32>
    %cst_72 = arith.constant 1.600000e+01 : f32
    %47 = vector.broadcast %cst_72 : f32 to vector<4x1x256xf32>
    %48 = arith.divf %46, %47 : vector<4x1x256xf32>
    %49 = vector.broadcast %41 : vector<4x1x256xf32> to vector<4x16x256xf32>
    %50 = arith.subf %37, %49 : vector<4x16x256xf32>
    %cst_73 = arith.constant 9.99999974E-6 : f32
    %51 = vector.broadcast %cst_73 : f32 to vector<4x1x256xf32>
    %52 = arith.addf %48, %51 : vector<4x1x256xf32>
    %53 = math.rsqrt %52 : vector<4x1x256xf32>
    %54 = vector.broadcast %53 : vector<4x1x256xf32> to vector<4x16x256xf32>
    %55 = arith.mulf %50, %54 : vector<4x16x256xf32>
    %c0_74 = arith.constant 0 : index
    %c0_75 = arith.constant 0 : index
    %c0_76 = arith.constant 0 : index
    %56 = vector.load %arg3[%c0_74, %c0_75, %c0_76] : memref<1x16x1xf32, #tpu.memory_space<vmem>>, vector<1x16x1xf32>
    %57 = vector.broadcast %56 : vector<1x16x1xf32> to vector<4x16x256xf32>
    %58 = arith.mulf %55, %57 : vector<4x16x256xf32>
    %c0_77 = arith.constant 0 : index
    %c0_78 = arith.constant 0 : index
    %c0_79 = arith.constant 0 : index
    %59 = vector.load %arg4[%c0_77, %c0_78, %c0_79] : memref<1x16x1xf32, #tpu.memory_space<vmem>>, vector<1x16x1xf32>
    %60 = vector.broadcast %59 : vector<1x16x1xf32> to vector<4x16x256xf32>
    %61 = arith.addf %58, %60 : vector<4x16x256xf32>
    %cst_80 = arith.constant 0.000000e+00 : f32
    %62 = vector.broadcast %cst_80 : f32 to vector<4x16x256xf32>
    %63 = arith.cmpf ogt, %61, %62 : vector<4x16x256xf32>
    %c0_81 = arith.constant 0 : index
    %c0_82 = arith.constant 0 : index
    %c0_83 = arith.constant 0 : index
    %64 = vector.load %arg5[%c0_81, %c0_82, %c0_83] : memref<1x1x256xf32, #tpu.memory_space<vmem>>, vector<1x1x256xf32>
    %65 = vector.broadcast %64 : vector<1x1x256xf32> to vector<4x16x256xf32>
    %66 = arith.mulf %65, %61 : vector<4x16x256xf32>
    %67 = arith.select %63, %61, %66 : vector<4x16x256xi1>, vector<4x16x256xf32>
    %c0_84 = arith.constant 0 : index
    %c0_85 = arith.constant 0 : index
    %c0_86 = arith.constant 0 : index
    %68 = vector.load %arg6[%c0_84, %c0_85, %c0_86] : memref<4x16x256xf32, #tpu.memory_space<vmem>>, vector<4x16x256xf32>
    tpu.vector_store %arg6[%c0_84, %c0_85, %c0_86], %67 {strides = array<i32>} : memref<4x16x256xf32, #tpu.memory_space<vmem>>, vector<4x16x256xf32>,
    return
  }
  func.func @transform_0(%arg0: i32) -> (i32, i32, i32) {
    %c0_i32 = arith.constant 0 : i32
    %c0_i32_0 = arith.constant 0 : i32
    %c0_i32_1 = arith.constant 0 : i32
    return %arg0, %c0_i32, %c0_i32_0 : i32, i32, i32
  }
  func.func @transform_1(%arg0: i32) -> (i32, i32) {
    %c0_i32 = arith.constant 0 : i32
    %c0_i32_0 = arith.constant 0 : i32
    %c0_i32_1 = arith.constant 0 : i32
    return %c0_i32, %c0_i32_0 : i32, i32
  }
  func.func @transform_2(%arg0: i32) -> (i32, i32, i32) {
    %c0_i32 = arith.constant 0 : i32
    %c0_i32_0 = arith.constant 0 : i32
    %c0_i32_1 = arith.constant 0 : i32
    %c0_i32_2 = arith.constant 0 : i32
    return %c0_i32, %c0_i32_0, %c0_i32_1 : i32, i32, i32
  }
  func.func @transform_3(%arg0: i32) -> (i32, i32, i32) {
    %c0_i32 = arith.constant 0 : i32
    %c0_i32_0 = arith.constant 0 : i32
    %c0_i32_1 = arith.constant 0 : i32
    %c0_i32_2 = arith.constant 0 : i32
    return %c0_i32, %c0_i32_0, %c0_i32_1 : i32, i32, i32
  }
  func.func @transform_4(%arg0: i32) -> (i32, i32, i32) {
    %c0_i32 = arith.constant 0 : i32
    %c0_i32_0 = arith.constant 0 : i32
    %c0_i32_1 = arith.constant 0 : i32
    %c0_i32_2 = arith.constant 0 : i32
    return %c0_i32, %c0_i32_0, %c0_i32_1 : i32, i32, i32
  }
  func.func @transform_5(%arg0: i32) -> (i32, i32, i32) {
    %c0_i32 = arith.constant 0 : i32
    %c0_i32_0 = arith.constant 0 : i32
    %c0_i32_1 = arith.constant 0 : i32
    return %arg0, %c0_i32, %c0_i32_0 : i32, i32, i32
  }
}

</mosaic_0001>

<bundles_post_ra>
// kernel: tpu_custom_call.1
= control target key start
LH: loop header
LB: loop body
LE: loop exit
PB: predicated region body
PF: predicated region fallthrough
CT: control target
= control target key end

     0   :  { %10 = vsyncpa [#allocation4], 0  ;;  %s2246_s0 = inlined_call_operand.hbm [shape: f32[8,1,2432], index: 0, kind: input, shape index: {}]   ;;  %s2247_s1 = inlined_call_operand.hbm [shape: bf16[256,256], index: 1, kind: input, shape index: {}]   ;;  %s2248_s2 = inlined_call_operand.vmem [shape: f32[1,16,1], index: 2, kind: input, shape index: {}]   ;;  %s2249_s3 = inlined_call_operand.vmem [shape: f32[1,16,1], index: 3, kind: input, shape index: {}]   ;;  %s2250_s4 = inlined_call_operand.vmem [shape: f32[1,1,256], index: 4, kind: input, shape index: {}]   ;;  %s2251_s5 = inlined_call_operand.hbm [shape: f32[8,16,256], index: 5, kind: output, shape index: {}]  }
   0x1   :  { %12 = vsyncpa [#allocation4 + $0x1], 0 }
   0x2   :  { %13 = vsyncpa [#allocation7], 0 }
   0x3   :  { %14 = vsyncpa [#allocation5], 0 }
   0x4   :  { %16 = vsyncpa [#allocation5 + $0x1], 0  ;;  %s1617_s18 = smov 0   ;;  %s1619_s19 = smov 0  }
   0x5   :  { %s1621_s20 = smov 0   ;;  %s1623_s21 = smov 0  }
   0x6 LB: > { %s1638_s22 = sadd.s32 4294967295, %s1575_s21   ;;  %s1232_s23 = sadd.s32 4294967294, %s1575_s21   ;;  %s1575_s21 = sphi %s1623_s21, %s2273_s21   ;;  %s1571_s20 = sphi %s1621_s20, %s2272_s20   ;;  %s1567_s19 = sphi %s1619_s19, %s2271_s19   ;;  %s1563_s18 = sphi %s1617_s18, %s2270_s18  }
   0x7   : > { %p42_p0 = scmp.ne.s32.totalorder %s1567_s19, %s1563_s18  ;;  %p2252_p1 = scmp.eq.s32.totalorder %s1638_s22, 0 }
   0x8   : > { %p156_p3 = scmp.eq.s32.totalorder %s1232_s23, 1  ;;  %p1233_p5 = scmp.ge.s32.totalorder %s1575_s21, 1 }
   0x9   : > { %p1647_p4 = por %p2252_p1, %p42_p0  ;;  %p163_p7 = scmp.lt.s32.totalorder %s1575_s21, 3 }
   0xa   : > { %p1652_p6 = por %p156_p3, %p42_p0  ;;  %s1577_s27 = smov [#allocation6]  }
   0xb   : > { %s2255_s24 = scalar_select %p1647_p4, 1, 0 }
   0xc   : > { %s2256_s25 = scalar_select %p1652_p6, 1, 0 }
   0xd   : > { %p1657_p8 = pnand %p1233_p5, %p163_p7  ;;  %s175_s28 = sshll.u32 %s1577_s27, 4  ;;  %s1661_s28 = int_to_ptr.vmem [resolvable:$true] %s175_s28 }
   0xe   : > { %s1673_s30 = sadd.s32 1, %s1575_s21   ;;  %s29_s6 = sadd.s32 1, %s1571_s20 }
   0xf   : > { %s2257_s26 = scalar_select %p1657_p8, 1, 0 }
  0x10   : > { %p1325_p9 = pneg %p1657_p8  ;;  %s26_s7 = ssub.s32 %s1575_s21, %s1673_s30 }
  0x11   : > { %s1447_s10 = scalar_lea.hbm %s2247_s1, 4096 }
  0x12   : > { %p1668_p11 = pnand %p1325_p9, %p2252_p1  ;;  %p1448_p12 = scmp.ne.s32.totalorder %s2247_s1, %s1447_s10 }
  0x13   : > { %p1454_p5 = scmp.lt.u32.totalorder %s1447_s10, %s2247_s1 }
  0x14   : > { %p1449_p13 = pneg %p1668_p11 }
  0x16   : > { %p1450_p0 = pnand %p1449_p13, %p1448_p12 }
  0x18   : > { %p1451_p3 = pneg %p1450_p0 }
  0x1a   : > { %p1456_p7 = pnand %p1454_p5, %p1451_p3 }
  0x1c   : > { %1459 = shalt.err (!%p1456_p7)
}
  0x1d   : > { %s1460_s15 = scalar_lea.vmem %s1661_s28, 4096  ;;  %p1468_p2 = scmp.lt.s32.totalorder %s1661_s28, %s1661_s28 }
  0x1e   : > { %p1461_p9 = scmp.ne.s32.totalorder %s1661_s28, %s1460_s15  ;;  %p1469_p6 = scmp.lt.s32.totalorder %s1460_s15, %s1460_s15 }
  0x20   : > { %p1463_p10 = pnand %p1461_p9, %p1449_p13  ;;  %p1470_p4 = por %p1469_p6, %p1468_p2 }
  0x22   : > { %p1464_p1 = pneg %p1463_p10 }
  0x24   : > { %p1471_p8 = pnand %p1470_p4, %p1464_p1 }
  0x26   : > { %1474 = shalt.err (!%p1471_p8)
}
  0x27   : > { %s1578_s16 = smov 128   ;;  %s1579_s17 = smov 8  }
  0x28   : > { %1328 = dma.hbm_to_vmem [thread:$0]  (!%p1668_p11), %s2247_s1, 4096, %s1661_s28, [#allocation7], %s1578_s16, %s1578_s16, %s1579_s17  }
  0x29   : > { %p27_p2 = scmp.eq.s32.totalorder %s26_s7, 0  ;;  %p36_p1 = scmp.ne.s32.totalorder %s1571_s20, %s1567_s19 }
  0x2a   : > { %p37_p4 = scmp.eq.s32.totalorder %s1575_s21, 0  ;;  %p1338_p6 = scmp.lt.s32.totalorder %s1575_s21, 2 }
  0x2b   : > { %s1704_s8 = scalar_select %p27_p2, %s1571_s20, %s29_s6  }
  0x2c   : > { %p38_p8 = por %p37_p4, %p36_p1  ;;  %p2259_p10 = scmp.eq.s32.totalorder %s1638_s22, 1 }
  0x2d   : > { %s198_s10 = sand.u32 1, %s1571_s20   ;;  %s1315_s11 = smul.u32 1216, %s1575_s21 }
  0x2e   : > { %p1708_p12 = por %p2259_p10, %p36_p1  ;;  %s1314_s12 = smul.u32 76, %s198_s10 }
  0x2f   : > { %s1717_s14 = scalar_lea.hbm %s2246_s0, %s1315_s11  ;;  %p1719_p11 = pnand %p1338_p6, %p38_p8 }
  0x30   : > { %s202_s6 = scalar_lea.vmem [#allocation3], %s1314_s12  ;;  %s1725_s15 = scalar_lea.sflag [#allocation4], %s198_s10 }
  0x31   : > { %s210_s7 = sshll.u32 %s202_s6, 4  ;;  %s1475_s16 = scalar_lea.hbm %s1717_s14, 1216  ;;  %s1723_s7 = int_to_ptr.vmem [resolvable:$true] %s210_s7 }
  0x32   : > { %p1476_p13 = scmp.ne.s32.totalorder %s1717_s14, %s1475_s16  ;;  %p1477_p0 = pneg %p1719_p11 }
  0x33   : > { %s1480_s27 = scalar_lea.hbm %s2246_s0, 2432  ;;  %p1481_p7 = scmp.lt.u32.totalorder %s1717_s14, %s2246_s0 }
  0x34   : > { %p1478_p3 = pnand %p1477_p0, %p1476_p13  ;;  %p1482_p9 = scmp.lt.u32.totalorder %s1480_s27, %s1475_s16 }
  0x35   : > { %p1484_p1 = scmp.lt.u32.totalorder %s1475_s16, %s1717_s14 }
  0x36   : > { %p1479_p5 = pneg %p1478_p3  ;;  %p1483_p2 = por %p1482_p9, %p1481_p7 }
  0x38   : > { %p1485_p4 = por %p1484_p1, %p1483_p2 }
  0x3a   : > { %p1486_p6 = pnand %p1485_p4, %p1479_p5 }
  0x3c   : > { %1489 = shalt.err (!%p1486_p6)
}
  0x3d   : > { %s1490_s10 = scalar_lea.vmem %s1723_s7, 1216  ;;  %s1580_s12 = smov [#allocation3]  }
  0x3e   : > { %p1491_p8 = scmp.ne.s32.totalorder %s1723_s7, %s1490_s10  ;;  %s1495_s13 = sshll.u32 %s1580_s12, 4  ;;  %s1496_s13 = int_to_ptr.vmem [resolvable:$false] %s1495_s13 }
  0x3f   : > { %s1497_s6 = scalar_lea.vmem %s1496_s13, 2432  ;;  %p1498_p3 = scmp.lt.s32.totalorder %s1723_s7, %s1496_s13 }
  0x40   : > { %p1493_p10 = pnand %p1491_p8, %p1477_p0  ;;  %p1499_p7 = scmp.lt.s32.totalorder %s1497_s6, %s1490_s10 }
  0x42   : > { %p1494_p13 = pneg %p1493_p10  ;;  %p1500_p9 = por %p1499_p7, %p1498_p3 }
  0x44   : > { %p1501_p2 = pnand %p1500_p9, %p1494_p13 }
  0x46   : > { %1504 = shalt.err (!%p1501_p2)
}
  0x47   : > { %s1581_s16 = smov 304   ;;  %s1582_s17 = smov 19  }
  0x48   : > { %1332 = dma.hbm_to_vmem [thread:$0]  (!%p1719_p11), %s1717_s14, 1216, %s1723_s7, %s1725_s15, %s1581_s16, %s1581_s16, %s1582_s17  }
  0x49   : > { %p2262_p0 = scmp.ne.s32.totalorder %s2257_s26, 0 }
  0x4a   : > { %s1756_s23 = sand.u32 (!%p2262_p0), 1, %s1567_s19   ;;  %p2263_p5 = scmp.ne.s32.totalorder (!%p2262_p0), %s2255_s24, 0 }
  0x4b   : > { %222 = sbr.rel (%p2262_p0) target bundleno = 479 (0x1df), region = 40  ;;  %s225_s11 = scalar_lea.sflag (!%p2262_p0), [#allocation4], %s1756_s23 }
  0x4c   : > { %s1316_s27 = smul.u32 (!%p2262_p0), 76, %s1756_s23 }
  0x4e   : > { %s1760_s29 = scalar_lea.vmem (!%p2262_p0), [#allocation3], %s1316_s27 }
  0x52   : > { %1550 = dma.done.wait (%p2263_p5), %s225_s11, 1216  }
  0x53   : > { %1552 = vsyncadd (%p2263_p5), %s225_s11, 4294966080  ;;  %p2264_p11 = scmp.eq.s32.totalorder %s1638_s22, 0 }
  0x55   : > { %1554 = dma.done.wait (%p2264_p11), [#allocation7], 4096   ;;  %p2265_p1 = pmov %p2264_p11 }
  0x56   : > { %v1583_v0 = vmov 0   ;;  %v1383_v1 = vld [vmem:[#allocation6 + $0x4] ss:$8 sps:$4 sm:$0xff]   ;;  %v1385_v2 = vld [vmem:[#allocation6] ss:$8 sps:$4 sm:$0xff]   ;;  %v265_v11 = vlaneseq  ;;  %v1003_v14 = vld [vmem:[%s2248_s2 + $0x8] sm:$0xff] }
  0x57   : > { %1556 = vsyncadd (%p2265_p1), [#allocation7], 4294963200  ;;  %1381 = vset.pattern.permute.xlu0 %v1583_v0  ;;  %1382 = vset.pattern.permute.xlu1 %v1583_v0  ;;  %v1386_v3 = vld [vmem:[#allocation6 + $0x14] ss:$8 sps:$4 sm:$0xff]   ;;  %v1388_v4 = vld [vmem:[#allocation6 + $0x10] ss:$8 sps:$4 sm:$0xff]  }
  0x58   : > { %736 = vmatprep.subr.bf16.mxu0 %v1383_v1  ;;  %1282 = vmatprep.subr.bf16.mxu1 %v1383_v1  ;;  %v1389_v5 = vld [vmem:[#allocation6 + $0x24] ss:$8 sps:$4 sm:$0xff]   ;;  %v1391_v6 = vld [vmem:[#allocation6 + $0x20] ss:$8 sps:$4 sm:$0xff]   ;;  %v1392_v7 = vld [vmem:[#allocation6 + $0x34] ss:$8 sps:$4 sm:$0xff]  }
  0x59   : > { %737 = vmatpush1.bf16.msra.mxu0 %v1385_v2  ;;  %1298 = vmatpush1.bf16.msra.mxu1 %v1385_v2  ;;  %v1394_v8 = vld [vmem:[#allocation6 + $0x30] ss:$8 sps:$4 sm:$0xff]   ;;  %v1395_v9 = vld [vmem:[#allocation6 + $0x44] ss:$8 sps:$4 sm:$0xff]   ;;  %v1397_v10 = vld [vmem:[#allocation6 + $0x40] ss:$8 sps:$4 sm:$0xff]  }
  0x5a   : > { %738 = vmatprep.subr.bf16.mxu0 %v1386_v3  ;;  %1283 = vmatprep.subr.bf16.mxu1 %v1386_v3  ;;  %v1398_v12 = vld [vmem:[#allocation6 + $0x54] ss:$8 sps:$4 sm:$0xff]   ;;  %v1400_v13 = vld [vmem:[#allocation6 + $0x50] ss:$8 sps:$4 sm:$0xff]   ;;  %vm1771_vm0 = vcmp.lt.s32.totalorder %v265_v11, 256  ;;  %s1241_s16 = sshll.u32 %s1756_s23, 7 }
  0x5b   : > { %v1401_v15 = vld [vmem:[#allocation6 + $0x64] ss:$8 sps:$4 sm:$0xff]   ;;  %v1403_v16 = vld [vmem:[#allocation6 + $0x60] ss:$8 sps:$4 sm:$0xff]   ;;  %v1404_v19 = vld [vmem:[#allocation6 + $0x74] ss:$8 sps:$4 sm:$0xff]  }
  0x5c   : > { %v261_v17 = vld [vmem:[%s1760_s29 + $0x1] sm:$0x3]  ;;  %v296_v20 = vld [vmem:[%s1760_s29 + $0x3] sm:$0x3]  ;;  %v328_v22 = vld [vmem:[%s1760_s29 + $0x5] sm:$0x3] }
  0x5d   : > { %739 = vmatpush1.bf16.msra.mxu0 %v1388_v4  ;;  %1299 = vmatpush1.bf16.msra.mxu1 %v1388_v4  ;;  %v280_v18 = vld [vmem:[%s1760_s29 + $0x2] sm:$0x3]  ;;  %269 = vst.msk [vmem:[#allocation2] ss:$8 sm:$0x3] %vm1771_vm0, %v261_v17  ;;  %s2131_s17 = scalar_lea.vmem [#allocation8], %s1241_s16 }
  0x5e   : > { %740 = vmatprep.subr.bf16.mxu0 %v1389_v5  ;;  %1284 = vmatprep.subr.bf16.mxu1 %v1389_v5  ;;  %285 = vst.msk [vmem:[#allocation2 + $0x1] ss:$8 sm:$0x3] %vm1771_vm0, %v280_v18  ;;  %v312_v21 = vld [vmem:[%s1760_s29 + $0x4] sm:$0x3]  ;;  %s1281_s27 = sshll.u32 %s1638_s22, 11 }
  0x5f   : > { %301 = vst.msk [vmem:[#allocation2 + $0x2] ss:$8 sm:$0x3] %vm1771_vm0, %v296_v20  ;;  %317 = vst.msk [vmem:[#allocation2 + $0x3] ss:$8 sm:$0x3] %vm1771_vm0, %v312_v21  ;;  %s2198_s26 = scalar_lea.hbm %s2251_s5, %s1281_s27 }
  0x60   : > { %333 = vst.msk [vmem:[#allocation2 + $0x4] ss:$8 sm:$0x3] %vm1771_vm0, %v328_v22  ;;  %v344_v23 = vld [vmem:[%s1760_s29 + $0x6] sm:$0x3]  ;;  %s1149_s11 = sshll.u32 %s2131_s17, 4  ;;  %s2200_s11 = int_to_ptr.vmem [resolvable:$true] %s1149_s11 }
  0x61   : > { %741 = vmatpush1.bf16.msra.mxu0 %v1391_v6  ;;  %1300 = vmatpush1.bf16.msra.mxu1 %v1391_v6  ;;  %v360_v24 = vld [vmem:[%s1760_s29 + $0x7] sm:$0x3]  ;;  %349 = vst.msk [vmem:[#allocation2 + $0x5] ss:$8 sm:$0x3] %vm1771_vm0, %v344_v23  ;;  %s1135_s22 = scalar_lea.sflag [#allocation5], %s1756_s23 }
  0x62   : > { %742 = vmatprep.subr.bf16.mxu0 %v1392_v7  ;;  %1285 = vmatprep.subr.bf16.mxu1 %v1392_v7  ;;  %v376_v25 = vld [vmem:[%s1760_s29 + $0x8] sm:$0x3]  ;;  %365 = vst.msk [vmem:[#allocation2 + $0x6] ss:$8 sm:$0x3] %vm1771_vm0, %v360_v24  ;;  %s1505_s14 = scalar_lea.vmem %s2200_s11, 2048 }
  0x63   : > { %381 = vst.msk [vmem:[#allocation2 + $0x7] ss:$8 sm:$0x3] %vm1771_vm0, %v376_v25  ;;  %v392_v26 = vld [vmem:[%s1760_s29 + $0x9] sm:$0x3]  ;;  %p1506_p4 = scmp.ne.s32.totalorder %s2200_s11, %s1505_s14  ;;  %s1584_s28 = smov [#allocation8]  }
  0x64   : > { %v408_v27 = vld [vmem:[%s1760_s29 + $0xa] sm:$0x3]  ;;  %397 = vst.msk [vmem:[#allocation2 + $0x10] ss:$8 sm:$0x3] %vm1771_vm0, %v392_v26  ;;  %s1509_s7 = sshll.u32 %s1584_s28, 4  ;;  %s1510_s7 = int_to_ptr.vmem [resolvable:$false] %s1509_s7 }
  0x65   : > { %743 = vmatpush1.bf16.msra.mxu0 %v1394_v8  ;;  %1301 = vmatpush1.bf16.msra.mxu1 %v1394_v8  ;;  %v424_v28 = vld [vmem:[%s1760_s29 + $0xb] sm:$0x3]  ;;  %413 = vst.msk [vmem:[#allocation2 + $0x11] ss:$8 sm:$0x3] %vm1771_vm0, %v408_v27  ;;  %p1507_p6 = pnand %p1506_p4, %p1708_p12  ;;  %s1511_s15 = scalar_lea.vmem %s1510_s7, 4096 }
  0x66   : > { %744 = vmatprep.subr.bf16.mxu0 %v1395_v9  ;;  %1286 = vmatprep.subr.bf16.mxu1 %v1395_v9  ;;  %v1406_v29 = vld [vmem:[#allocation6 + $0x70] ss:$8 sps:$4 sm:$0xff]   ;;  %429 = vst.msk [vmem:[#allocation2 + $0x12] ss:$8 sm:$0x3] %vm1771_vm0, %v424_v28  ;;  %p1512_p10 = scmp.lt.s32.totalorder %s2200_s11, %s1510_s7  ;;  %p1513_p13 = scmp.lt.s32.totalorder %s1511_s15, %s1505_s14 }
  0x67   : > { %v440_v30 = vld [vmem:[%s1760_s29 + $0xc] sm:$0x3]  ;;  %v472_v32 = vld [vmem:[%s1760_s29 + $0xe] sm:$0x3]  ;;  %v1407_v33 = vld [vmem:[#allocation6 + $0x84] ss:$8 sps:$4 sm:$0xff]   ;;  %p1508_p8 = pneg %p1507_p6 }
  0x68   : > { %v456_v31 = vld [vmem:[%s1760_s29 + $0xd] sm:$0x3]  ;;  %445 = vst.msk [vmem:[#allocation2 + $0x13] ss:$8 sm:$0x3] %vm1771_vm0, %v440_v30  ;;  %p1514_p3 = por %p1513_p13, %p1512_p10 }
  0x69   : > { %745 = vmatpush1.bf16.msra.mxu0 %v1397_v10  ;;  %1302 = vmatpush1.bf16.msra.mxu1 %v1397_v10  ;;  %461 = vst.msk [vmem:[#allocation2 + $0x14] ss:$8 sm:$0x3] %vm1771_vm0, %v456_v31  ;;  %477 = vst.msk [vmem:[#allocation2 + $0x15] ss:$8 sm:$0x3] %vm1771_vm0, %v472_v32 }
  0x6a   : > { %746 = vmatprep.subr.bf16.mxu0 %v1398_v12  ;;  %1287 = vmatprep.subr.bf16.mxu1 %v1398_v12  ;;  %v488_v34 = vld [vmem:[%s1760_s29 + $0xf] sm:$0x3]  ;;  %v263_v36 = vld [vmem:[%s1760_s29 + $0x27] sm:$0x3]  ;;  %v298_v38 = vld [vmem:[%s1760_s29 + $0x29] sm:$0x3]  ;;  %p1515_p7 = pnand %p1514_p3, %p1508_p8 }
  0x6b   : > { %v504_v35 = vld [vmem:[%s1760_s29 + $0x10] sm:$0x3]  ;;  %493 = vst.msk [vmem:[#allocation2 + $0x16] ss:$8 sm:$0x3] %vm1771_vm0, %v488_v34  ;;  %v521_v53 = vld [vmem:[#allocation2 + $0x8] sm:$0xff] }
  0x6c   : > { %509 = vst.msk [vmem:[#allocation2 + $0x17] ss:$8 sm:$0x3] %vm1771_vm0, %v504_v35  ;;  %275 = vst.msk [vmem:[#allocation2 + $0x40] ss:$8 sm:$0x3] %vm1771_vm0, %v263_v36 }
  0x6d   : > { %747 = vmatpush1.bf16.msra.mxu0 %v1400_v13  ;;  %1303 = vmatpush1.bf16.msra.mxu1 %v1400_v13  ;;  %v282_v37 = vld [vmem:[%s1760_s29 + $0x28] sm:$0x3]  ;;  %v314_v39 = vld [vmem:[%s1760_s29 + $0x2a] sm:$0x3]  ;;  %v346_v41 = vld [vmem:[%s1760_s29 + $0x2c] sm:$0x3] }
  0x6e   : > { %748 = vmatprep.subr.bf16.mxu0 %v1401_v15  ;;  %1288 = vmatprep.subr.bf16.mxu1 %v1401_v15  ;;  %291 = vst.msk [vmem:[#allocation2 + $0x41] ss:$8 sm:$0x3] %vm1771_vm0, %v282_v37  ;;  %307 = vst.msk [vmem:[#allocation2 + $0x42] ss:$8 sm:$0x3] %vm1771_vm0, %v298_v38 }
  0x6f   : > { %323 = vst.msk [vmem:[#allocation2 + $0x43] ss:$8 sm:$0x3] %vm1771_vm0, %v314_v39  ;;  %v330_v40 = vld [vmem:[%s1760_s29 + $0x2b] sm:$0x3]  ;;  %v1002_v36 = vld [vmem:[%s2248_s2] sm:$0xff] }
  0x70   : > { %v362_v42 = vld [vmem:[%s1760_s29 + $0x2d] sm:$0x3]  ;;  %339 = vst.msk [vmem:[#allocation2 + $0x44] ss:$8 sm:$0x3] %vm1771_vm0, %v330_v40  ;;  %v1030_v37 = vld [vmem:[%s2249_s3] sm:$0xff]  ;;  %1006 = vperm.xlu0 %1381, %v1002_v36  }
  0x71   : > { %749 = vmatpush1.bf16.msra.mxu0 %v1403_v16  ;;  %1304 = vmatpush1.bf16.msra.mxu1 %v1403_v16  ;;  %v1409_v43 = vld [vmem:[#allocation6 + $0x80] ss:$8 sps:$4 sm:$0xff]   ;;  %355 = vst.msk [vmem:[#allocation2 + $0x45] ss:$8 sm:$0x3] %vm1771_vm0, %v346_v41  ;;  %v1031_v40 = vld [vmem:[%s2249_s3 + $0x8] sm:$0xff] }
  0x72   : > { %750 = vmatprep.subr.bf16.mxu0 %v1404_v19  ;;  %1289 = vmatprep.subr.bf16.mxu1 %v1404_v19  ;;  %371 = vst.msk [vmem:[#allocation2 + $0x46] ss:$8 sm:$0x3] %vm1771_vm0, %v362_v42  ;;  %v378_v44 = vld [vmem:[%s1760_s29 + $0x2e] sm:$0x3] }
  0x73   : > { %v394_v45 = vld [vmem:[%s1760_s29 + $0x2f] sm:$0x3]  ;;  %387 = vst.msk [vmem:[#allocation2 + $0x47] ss:$8 sm:$0x3] %vm1771_vm0, %v378_v44  ;;  %1034 = vperm.xlu1 %1382, %v1030_v37  }
  0x74   : > { %v410_v46 = vld [vmem:[%s1760_s29 + $0x30] sm:$0x3]  ;;  %403 = vst.msk [vmem:[#allocation2 + $0x50] ss:$8 sm:$0x3] %vm1771_vm0, %v394_v45  ;;  %1011 = vperm.xlu0 %1381, %v1003_v14  }
  0x75   : > { %419 = vst.msk [vmem:[#allocation2 + $0x51] ss:$8 sm:$0x3] %vm1771_vm0, %v410_v46  ;;  %v426_v47 = vld [vmem:[%s1760_s29 + $0x31] sm:$0x3]  ;;  %751 = vmatpush1.bf16.msra.mxu0 %v1406_v29  ;;  %1305 = vmatpush1.bf16.msra.mxu1 %v1406_v29  ;;  %v520_v46 = vld [vmem:[#allocation2] sm:$0xff] }
  0x76   : > { %v442_v48 = vld [vmem:[%s1760_s29 + $0x32] sm:$0x3]  ;;  %v1410_v50 = vld [vmem:[#allocation6 + $0x94] ss:$8 sps:$4 sm:$0xff]   ;;  %752 = vmatprep.subr.bf16.mxu0 %v1407_v33  ;;  %1290 = vmatprep.subr.bf16.mxu1 %v1407_v33  ;;  %v329_v62 = vld [vmem:[%s1760_s29 + $0x18] sm:$0x3] }
  0x77   : > { %v458_v49 = vld [vmem:[%s1760_s29 + $0x33] sm:$0x3]  ;;  %435 = vst.msk [vmem:[#allocation2 + $0x52] ss:$8 sm:$0x3] %vm1771_vm0, %v426_v47  ;;  %1039 = vperm.xlu1 %1382, %v1031_v40  }
  0x78   : > { %451 = vst.msk [vmem:[#allocation2 + $0x53] ss:$8 sm:$0x3] %vm1771_vm0, %v442_v48  ;;  %467 = vst.msk [vmem:[#allocation2 + $0x54] ss:$8 sm:$0x3] %vm1771_vm0, %v458_v49 }
  0x79   : > { %v474_v51 = vld [vmem:[%s1760_s29 + $0x34] sm:$0x3]  ;;  %v506_v54 = vld [vmem:[%s1760_s29 + $0x36] sm:$0x3]  ;;  %v1412_v56 = vld [vmem:[#allocation6 + $0x90] ss:$8 sps:$4 sm:$0xff]   ;;  %753 = vmatpush1.bf16.msra.mxu0 %v1409_v43  ;;  %1306 = vmatpush1.bf16.msra.mxu1 %v1409_v43 }
  0x7a   : > { %v490_v52 = vld [vmem:[%s1760_s29 + $0x35] sm:$0x3]  ;;  %483 = vst.msk [vmem:[#allocation2 + $0x55] ss:$8 sm:$0x3] %vm1771_vm0, %v474_v51  ;;  %v523_v61 = vld [vmem:[#allocation2 + $0x18] sm:$0xff]  ;;  %754 = vmatprep.subr.bf16.mxu0 %v1410_v50  ;;  %1291 = vmatprep.subr.bf16.mxu1 %v1410_v50 }
  0x7b   : > { %499 = vst.msk [vmem:[#allocation2 + $0x56] ss:$8 sm:$0x3] %vm1771_vm0, %v490_v52  ;;  %v262_v55 = vld [vmem:[%s1760_s29 + $0x14] sm:$0x3]  ;;  %v537_v63 = vpack.c.bf16 %v523_v61, %v521_v53  ;;  %v529_v7 = vld [vmem:[#allocation2 + $0x48] sm:$0xff] }
  0x7c   : > { %515 = vst.msk [vmem:[#allocation2 + $0x57] ss:$8 sm:$0x3] %vm1771_vm0, %v506_v54  ;;  %272 = vst.msk [vmem:[#allocation2 + $0x20] ss:$8 sm:$0x3] %vm1771_vm0, %v262_v55 }
  0x7d   : > { %v281_v57 = vld [vmem:[%s1760_s29 + $0x15] sm:$0x3]  ;;  %v313_v59 = vld [vmem:[%s1760_s29 + $0x17] sm:$0x3]  ;;  %v345_v0 = vld [vmem:[%s1760_s29 + $0x19] sm:$0x3]  ;;  %768 = vmatprep.mubr.bf16.mxu0 %v537_v63  ;;  %755 = vmatpush1.bf16.msra.mxu0 %v1412_v56 }
  0x7e   : > { %v297_v58 = vld [vmem:[%s1760_s29 + $0x16] sm:$0x3]  ;;  %v1413_v60 = vld [vmem:[#allocation6 + $0xa4] ss:$8 sps:$4 sm:$0xff]   ;;  %v457_v9 = vld [vmem:[%s1760_s29 + $0x20] sm:$0x3]  ;;  %1307 = vmatpush1.bf16.msra.mxu1 %v1412_v56 }
  0x7f   : > { %288 = vst.msk [vmem:[#allocation2 + $0x21] ss:$8 sm:$0x3] %vm1771_vm0, %v281_v57  ;;  %304 = vst.msk [vmem:[#allocation2 + $0x22] ss:$8 sm:$0x3] %vm1771_vm0, %v297_v58  ;;  %756 = vmatprep.subr.bf16.mxu0 %v1413_v60  ;;  %1292 = vmatprep.subr.bf16.mxu1 %v1413_v60 }
  0x80   : > { %320 = vst.msk [vmem:[#allocation2 + $0x23] ss:$8 sm:$0x3] %vm1771_vm0, %v313_v59  ;;  %336 = vst.msk [vmem:[#allocation2 + $0x24] ss:$8 sm:$0x3] %vm1771_vm0, %v329_v62 }
  0x81   : > { %v361_v1 = vld [vmem:[%s1760_s29 + $0x1a] sm:$0x3]  ;;  %352 = vst.msk [vmem:[#allocation2 + $0x25] ss:$8 sm:$0x3] %vm1771_vm0, %v345_v0  ;;  %v522_v47 = vld [vmem:[#allocation2 + $0x10] sm:$0xff] }
  0x82   : > { %v377_v2 = vld [vmem:[%s1760_s29 + $0x1b] sm:$0x3]  ;;  %368 = vst.msk [vmem:[#allocation2 + $0x26] ss:$8 sm:$0x3] %vm1771_vm0, %v361_v1  ;;  %v536_v54 = vpack.c.bf16 %v522_v47, %v520_v46 }
  0x83   : > { %384 = vst.msk [vmem:[#allocation2 + $0x27] ss:$8 sm:$0x3] %vm1771_vm0, %v377_v2  ;;  %v393_v3 = vld [vmem:[%s1760_s29 + $0x1c] sm:$0x3]  ;;  %v528_v48 = vld [vmem:[#allocation2 + $0x40] sm:$0xff] }
  0x84   : > { %v409_v4 = vld [vmem:[%s1760_s29 + $0x1d] sm:$0x3]  ;;  %v1415_v6 = vld [vmem:[#allocation6 + $0xa0] ss:$8 sps:$4 sm:$0xff]   ;;  %v1416_v17 = vld [vmem:[#allocation6 + $0xb4] ss:$8 sps:$4 sm:$0xff]  }
  0x85   : > { %v425_v5 = vld [vmem:[%s1760_s29 + $0x1e] sm:$0x3]  ;;  %400 = vst.msk [vmem:[#allocation2 + $0x30] ss:$8 sm:$0x3] %vm1771_vm0, %v393_v3  ;;  %757 = vmatpush1.bf16.msra.mxu0 %v1415_v6  ;;  %1308 = vmatpush1.bf16.msra.mxu1 %v1415_v6  ;;  %v530_v49 = vld [vmem:[#allocation2 + $0x50] sm:$0xff] }
  0x86   : > { %416 = vst.msk [vmem:[#allocation2 + $0x31] ss:$8 sm:$0x3] %vm1771_vm0, %v409_v4  ;;  %432 = vst.msk [vmem:[#allocation2 + $0x32] ss:$8 sm:$0x3] %vm1771_vm0, %v425_v5  ;;  %758 = vmatprep.subr.bf16.mxu0 %v1416_v17  ;;  %1293 = vmatprep.subr.bf16.mxu1 %v1416_v17  ;;  %v540_v55 = vpack.c.bf16 %v530_v49, %v528_v48 }
  0x87   : > { %v441_v8 = vld [vmem:[%s1760_s29 + $0x1f] sm:$0x3]  ;;  %v473_v10 = vld [vmem:[%s1760_s29 + $0x21] sm:$0x3]  ;;  %v505_v13 = vld [vmem:[%s1760_s29 + $0x23] sm:$0x3] }
  0x88   : > { %448 = vst.msk [vmem:[#allocation2 + $0x33] ss:$8 sm:$0x3] %vm1771_vm0, %v441_v8  ;;  %v489_v12 = vld [vmem:[%s1760_s29 + $0x22] sm:$0x3]  ;;  %v531_v18 = vld [vmem:[#allocation2 + $0x58] sm:$0xff] }
  0x89   : > { %464 = vst.msk [vmem:[#allocation2 + $0x34] ss:$8 sm:$0x3] %vm1771_vm0, %v457_v9  ;;  %480 = vst.msk [vmem:[#allocation2 + $0x35] ss:$8 sm:$0x3] %vm1771_vm0, %v473_v10  ;;  %v541_v21 = vpack.c.bf16 %v531_v18, %v529_v7 }
  0x8a   : > { %496 = vst.msk [vmem:[#allocation2 + $0x36] ss:$8 sm:$0x3] %vm1771_vm0, %v489_v12  ;;  %v264_v15 = vld [vmem:[%s1760_s29 + $0x3a] sm:$0x3]  ;;  %v525_v50 = vld [vmem:[#allocation2 + $0x28] sm:$0xff] }
  0x8b   : > { %v283_v16 = vld [vmem:[%s1760_s29 + $0x3b] sm:$0x3]  ;;  %512 = vst.msk [vmem:[#allocation2 + $0x37] ss:$8 sm:$0x3] %vm1771_vm0, %v505_v13  ;;  %788 = vmatprep.mubr.bf16.mxu1 %v541_v21 }
  0x8c   : > { %278 = vst.msk [vmem:[#allocation2 + $0x60] ss:$8 sm:$0x3] %vm1771_vm0, %v264_v15  ;;  %294 = vst.msk [vmem:[#allocation2 + $0x61] ss:$8 sm:$0x3] %vm1771_vm0, %v283_v16 }
  0x8d   : > { %v299_v19 = vld [vmem:[%s1760_s29 + $0x3c] sm:$0x3]  ;;  %v331_v23 = vld [vmem:[%s1760_s29 + $0x3e] sm:$0x3]  ;;  %v363_v25 = vld [vmem:[%s1760_s29 + $0x40] sm:$0x3] }
  0x8e   : > { %v1418_v20 = vld [vmem:[#allocation6 + $0xb0] ss:$8 sps:$4 sm:$0xff]   ;;  %310 = vst.msk [vmem:[#allocation2 + $0x62] ss:$8 sm:$0x3] %vm1771_vm0, %v299_v19  ;;  %v524_v58 = vld [vmem:[#allocation2 + $0x20] sm:$0xff] }
  0x8f   : > { %v315_v22 = vld [vmem:[%s1760_s29 + $0x3d] sm:$0x3]  ;;  %v347_v24 = vld [vmem:[%s1760_s29 + $0x3f] sm:$0x3]  ;;  %v379_v26 = vld [vmem:[%s1760_s29 + $0x41] sm:$0x3]  ;;  %759 = vmatpush1.bf16.msra.mxu0 %v1418_v20  ;;  %1309 = vmatpush1.bf16.msra.mxu1 %v1418_v20 }
  0x90   : > { %326 = vst.msk [vmem:[#allocation2 + $0x63] ss:$8 sm:$0x3] %vm1771_vm0, %v315_v22  ;;  %342 = vst.msk [vmem:[#allocation2 + $0x64] ss:$8 sm:$0x3] %vm1771_vm0, %v331_v23 }
  0x91   : > { %358 = vst.msk [vmem:[#allocation2 + $0x65] ss:$8 sm:$0x3] %vm1771_vm0, %v347_v24  ;;  %v395_v27 = vld [vmem:[%s1760_s29 + $0x42] sm:$0x3] }
  0x92   : > { %v1419_v28 = vld [vmem:[#allocation6 + $0xc4] ss:$8 sps:$4 sm:$0xff]   ;;  %374 = vst.msk [vmem:[#allocation2 + $0x66] ss:$8 sm:$0x3] %vm1771_vm0, %v363_v25  ;;  %v526_v59 = vld [vmem:[#allocation2 + $0x30] sm:$0xff] }
  0x93   : > { %390 = vst.msk [vmem:[#allocation2 + $0x67] ss:$8 sm:$0x3] %vm1771_vm0, %v379_v26  ;;  %406 = vst.msk [vmem:[#allocation2 + $0x70] ss:$8 sm:$0x3] %vm1771_vm0, %v395_v27  ;;  %760 = vmatprep.subr.bf16.mxu0 %v1419_v28  ;;  %1294 = vmatprep.subr.bf16.mxu1 %v1419_v28  ;;  %v538_v62 = vpack.c.bf16 %v526_v59, %v524_v58 }
  0x94   : > { %v411_v29 = vld [vmem:[%s1760_s29 + $0x43] sm:$0x3]  ;;  %v443_v31 = vld [vmem:[%s1760_s29 + $0x45] sm:$0x3]  ;;  %v475_v33 = vld [vmem:[%s1760_s29 + $0x47] sm:$0x3] }
  0x95   : > { %v427_v30 = vld [vmem:[%s1760_s29 + $0x44] sm:$0x3]  ;;  %422 = vst.msk [vmem:[#allocation2 + $0x71] ss:$8 sm:$0x3] %vm1771_vm0, %v411_v29  ;;  %v527_v51 = vld [vmem:[#allocation2 + $0x38] sm:$0xff] }
  0x96   : > { %438 = vst.msk [vmem:[#allocation2 + $0x72] ss:$8 sm:$0x3] %vm1771_vm0, %v427_v30  ;;  %v459_v32 = vld [vmem:[%s1760_s29 + $0x46] sm:$0x3]  ;;  %v539_v56 = vpack.c.bf16 %v527_v51, %v525_v50 }
  0x97   : > { %454 = vst.msk [vmem:[#allocation2 + $0x73] ss:$8 sm:$0x3] %vm1771_vm0, %v443_v31  ;;  %470 = vst.msk [vmem:[#allocation2 + $0x74] ss:$8 sm:$0x3] %vm1771_vm0, %v459_v32 }
  0x98   : > { %486 = vst.msk [vmem:[#allocation2 + $0x75] ss:$8 sm:$0x3] %vm1771_vm0, %v475_v33  ;;  %v491_v34 = vld [vmem:[%s1760_s29 + $0x48] sm:$0x3] }
  0x99   : > { %v507_v35 = vld [vmem:[%s1760_s29 + $0x49] sm:$0x3]  ;;  %502 = vst.msk [vmem:[#allocation2 + $0x76] ss:$8 sm:$0x3] %vm1771_vm0, %v491_v34 }
  0x9a   : > { %518 = vst.msk [vmem:[#allocation2 + $0x77] ss:$8 sm:$0x3] %vm1771_vm0, %v507_v35  ;;  %v1421_v38 = vld [vmem:[#allocation6 + $0xc0] ss:$8 sps:$4 sm:$0xff]   ;;  %v533_v52 = vld [vmem:[#allocation2 + $0x68] sm:$0xff] }
  0x9b   : > { %v1422_v39 = vld [vmem:[#allocation6 + $0xd4] ss:$8 sps:$4 sm:$0xff]   ;;  %761 = vmatpush1.bf16.msra.mxu0 %v1421_v38  ;;  %1310 = vmatpush1.bf16.msra.mxu1 %v1421_v38  ;;  %v1424_v41 = vld [vmem:[#allocation6 + $0xd0] ss:$8 sps:$4 sm:$0xff]   ;;  %v1425_v42 = vld [vmem:[#allocation6 + $0xe4] ss:$8 sps:$4 sm:$0xff]  }
  0x9c   : > { %762 = vmatprep.subr.bf16.mxu0 %v1422_v39  ;;  %1295 = vmatprep.subr.bf16.mxu1 %v1422_v39  ;;  %v1427_v43 = vld [vmem:[#allocation6 + $0xe0] ss:$8 sps:$4 sm:$0xff]   ;;  %v1428_v44 = vld [vmem:[#allocation6 + $0xf4] ss:$8 sps:$4 sm:$0xff]   ;;  %v1430_v45 = vld [vmem:[#allocation6 + $0xf0] ss:$8 sps:$4 sm:$0xff]  }
  0x9d   : > { %v532_v60 = vld [vmem:[#allocation2 + $0x60] sm:$0xff] }
  0x9f   : > { %763 = vmatpush1.bf16.msra.mxu0 %v1424_v41  ;;  %1311 = vmatpush1.bf16.msra.mxu1 %v1424_v41 }
  0xa0   : > { %764 = vmatprep.subr.bf16.mxu0 %v1425_v42  ;;  %1296 = vmatprep.subr.bf16.mxu1 %v1425_v42 }
  0xa1   : > { %v535_v53 = vld [vmem:[#allocation2 + $0x78] sm:$0xff]  ;;  %v534_v61 = vld [vmem:[#allocation2 + $0x70] sm:$0xff] }
  0xa2   : > { %v543_v57 = vpack.c.bf16 %v535_v53, %v533_v52  ;;  %v542_v63 = vpack.c.bf16 %v534_v61, %v532_v60 }
  0xa3   : > { %765 = vmatpush1.bf16.msra.mxu0 %v1427_v43  ;;  %1312 = vmatpush1.bf16.msra.mxu1 %v1427_v43 }
  0xa4   : > { %766 = vmatprep.subr.bf16.mxu0 %v1428_v44  ;;  %1297 = vmatprep.subr.bf16.mxu1 %v1428_v44 }
  0xa7   : > { %767 = vmatpush1.bf16.msra.mxu0 %v1430_v45  ;;  %1313 = vmatpush1.bf16.msra.mxu1 %v1430_v45 }
  0xaa   : > { %769 = vmatmul.mubr.bf16.vlgmr.msra.gmra.mrb[0].mxu0 %v536_v54  ;;  %789 = vmatmul.mubr.bf16.vlgmr.msra.gmra.mrb[0].mxu1 %v540_v55 }
  0xab   : > { %778 = vmatprep.mubr.bf16.mxu0 %v539_v56  ;;  %798 = vmatprep.mubr.bf16.mxu1 %v543_v57 }
  0xb2   : > { %779 = vmatmul.mubr.bf16.gmra.mrb[4].mxu0 %v538_v62  ;;  %799 = vmatmul.mubr.bf16.gmra.mrb[4].mxu1 %v542_v63 }
 0x17d   : > { %v1979_v0 = vpop.f32.mrb[0].mxu0  ;;  %v1981_v1 = vpop.f32.mrb[0].mxu1 }
 0x17e   : > { %v1983_v2 = vpop.f32.mrb[1].mxu0  ;;  %v1985_v3 = vpop.f32.mrb[1].mxu1 }
 0x17f   : > { %v774_v4 = vpop.f32.mrb[2].mxu0  ;;  %v794_v5 = vpop.f32.mrb[2].mxu1 }
 0x180   : > { %v809_v6 = vadd.f32 %v774_v4, %v1979_v0  ;;  %v837_v7 = vadd.f32 %v794_v5, %v1981_v1  ;;  %v776_v8 = vpop.f32.mrb[3].mxu0  ;;  %v796_v9 = vpop.f32.mrb[3].mxu1 }
 0x181   : > { %v816_v10 = vadd.f32 %v776_v8, %v1983_v2  ;;  %v844_v12 = vadd.f32 %v796_v9, %v1985_v3 }
 0x182   : > { %v810_v13 = vrot.slane %v809_v6, 4  ;;  %v838_v15 = vrot.slane %v837_v7, 4 }
 0x183   : > { %v817_v16 = vrot.slane %v816_v10, 4  ;;  %v845_v17 = vrot.slane %v844_v12, 4 }
 0x184   : > { %v811_v18 = vadd.f32 %v810_v13, %v809_v6  ;;  %v839_v19 = vadd.f32 %v838_v15, %v837_v7 }
 0x185   : > { %v818_v20 = vadd.f32 %v817_v16, %v816_v10  ;;  %v846_v21 = vadd.f32 %v845_v17, %v844_v12  ;;  %v1991_v22 = vpop.f32.mrb[4].mxu0  ;;  %v1993_v23 = vpop.f32.mrb[4].mxu1 }
 0x186   : > { %v812_v24 = vrot.slane %v811_v18, 2  ;;  %v840_v25 = vrot.slane %v839_v19, 2  ;;  %v1995_v26 = vpop.f32.mrb[5].mxu0  ;;  %v1997_v27 = vpop.f32.mrb[5].mxu1 }
 0x187   : > { %v819_v28 = vrot.slane %v818_v20, 2  ;;  %v847_v29 = vrot.slane %v846_v21, 2  ;;  %v1999_v30 = vpop.f32.mrb[6].mxu0  ;;  %v2001_v31 = vpop.f32.mrb[6].mxu1 }
 0x188   : > { %v813_v32 = vadd.f32 %v812_v24, %v811_v18  ;;  %v841_v33 = vadd.f32 %v840_v25, %v839_v19  ;;  %v823_v34 = vadd.f32 %v1999_v30, %v1991_v22  ;;  %v851_v35 = vadd.f32 %v2001_v31, %v1993_v23  ;;  %v2007_v36 = vpop.f32.mrb[7].mxu0  ;;  %v2009_v37 = vpop.f32.mrb[7].mxu1 }
 0x189   : > { %v820_v38 = vadd.f32 %v819_v28, %v818_v20  ;;  %v848_v39 = vadd.f32 %v847_v29, %v846_v21  ;;  %v830_v14 = vadd.f32 %v2007_v36, %v1995_v26  ;;  %v858_v40 = vadd.f32 %v2009_v37, %v1997_v27 }
 0x18a   : > { %v814_v41 = vrot.slane %v813_v32, 1  ;;  %v842_v42 = vrot.slane %v841_v33, 1  ;;  %v824_v43 = vrot.slane %v823_v34, 4  ;;  %v852_v44 = vrot.slane %v851_v35, 4 }
 0x18b   : > { %v821_v45 = vrot.slane %v820_v38, 1  ;;  %v849_v46 = vrot.slane %v848_v39, 1  ;;  %v831_v47 = vrot.slane %v830_v14, 4  ;;  %v859_v48 = vrot.slane %v858_v40, 4 }
 0x18c   : > { %v815_v49 = vadd.f32 %v814_v41, %v813_v32  ;;  %v843_v50 = vadd.f32 %v842_v42, %v841_v33  ;;  %v825_v51 = vadd.f32 %v824_v43, %v823_v34  ;;  %v853_v52 = vadd.f32 %v852_v44, %v851_v35 }
 0x18d   : > { %v822_v53 = vadd.f32 %v821_v45, %v820_v38  ;;  %v850_v54 = vadd.f32 %v849_v46, %v848_v39  ;;  %v832_v55 = vadd.f32 %v831_v47, %v830_v14  ;;  %v860_v56 = vadd.f32 %v859_v48, %v858_v40 }
 0x18e   : > { %v866_v57 = vmul.f32 0.0625, %v815_v49  ;;  %v870_v58 = vmul.f32 0.0625, %v843_v50  ;;  %v826_v59 = vrot.slane %v825_v51, 2  ;;  %v854_v60 = vrot.slane %v853_v52, 2 }
 0x18f   : > { %v867_v61 = vmul.f32 0.0625, %v822_v53  ;;  %v871_v62 = vmul.f32 0.0625, %v850_v54  ;;  %v833_v63 = vrot.slane %v832_v55, 2  ;;  %v861_v6 = vrot.slane %v860_v56, 2 }
 0x190   : > { %v2016_v7 = vsub.f32 %v1979_v0, %v866_v57  ;;  %v2018_v10 = vsub.f32 %v774_v4, %v866_v57  ;;  %v2021_v12 = vsub.f32 %v1981_v1, %v870_v58  ;;  %v2023_v13 = vsub.f32 %v794_v5, %v870_v58 }
 0x191   : > { %v2026_v15 = vsub.f32 %v1983_v2, %v867_v61  ;;  %v2028_v16 = vsub.f32 %v776_v8, %v867_v61  ;;  %v2031_v17 = vsub.f32 %v1985_v3, %v871_v62  ;;  %v2033_v18 = vsub.f32 %v796_v9, %v871_v62 }
 0x192   : > { %v890_v0 = vmul.f32 %v2016_v7, %v2016_v7  ;;  %v892_v4 = vmul.f32 %v2018_v10, %v2018_v10  ;;  %v898_v1 = vmul.f32 %v2021_v12, %v2021_v12  ;;  %v900_v2 = vmul.f32 %v2023_v13, %v2023_v13 }
 0x193   : > { %v891_v5 = vmul.f32 %v2026_v15, %v2026_v15  ;;  %v893_v3 = vmul.f32 %v2028_v16, %v2028_v16  ;;  %v899_v8 = vmul.f32 %v2031_v17, %v2031_v17  ;;  %v901_v9 = vmul.f32 %v2033_v18, %v2033_v18 }
 0x194   : > { %v906_v19 = vadd.f32 %v892_v4, %v890_v0  ;;  %v934_v20 = vadd.f32 %v900_v2, %v898_v1  ;;  %v827_v21 = vadd.f32 %v826_v59, %v825_v51  ;;  %v855_v24 = vadd.f32 %v854_v60, %v853_v52 }
 0x195   : > { %v913_v25 = vadd.f32 %v893_v3, %v891_v5  ;;  %v941_v28 = vadd.f32 %v901_v9, %v899_v8  ;;  %v834_v29 = vadd.f32 %v833_v63, %v832_v55  ;;  %v862_v32 = vadd.f32 %v861_v6, %v860_v56 }
 0x196   : > { %v907_v33 = vrot.slane %v906_v19, 4  ;;  %v935_v34 = vrot.slane %v934_v20, 4  ;;  %v828_v35 = vrot.slane %v827_v21, 1  ;;  %v856_v38 = vrot.slane %v855_v24, 1 }
 0x197   : > { %v914_v39 = vrot.slane %v913_v25, 4  ;;  %v942_v14 = vrot.slane %v941_v28, 4  ;;  %v835_v40 = vrot.slane %v834_v29, 1  ;;  %v863_v41 = vrot.slane %v862_v32, 1 }
 0x198   : > { %v908_v42 = vadd.f32 %v907_v33, %v906_v19  ;;  %v936_v43 = vadd.f32 %v935_v34, %v934_v20  ;;  %v829_v44 = vadd.f32 %v828_v35, %v827_v21  ;;  %v857_v45 = vadd.f32 %v856_v38, %v855_v24 }
 0x199   : > { %v915_v46 = vadd.f32 %v914_v39, %v913_v25  ;;  %v943_v47 = vadd.f32 %v942_v14, %v941_v28  ;;  %v836_v48 = vadd.f32 %v835_v40, %v834_v29  ;;  %v864_v49 = vadd.f32 %v863_v41, %v862_v32 }
 0x19a   : > { %v909_v50 = vrot.slane %v908_v42, 2  ;;  %v937_v51 = vrot.slane %v936_v43, 2  ;;  %v868_v52 = vmul.f32 0.0625, %v829_v44  ;;  %v872_v53 = vmul.f32 0.0625, %v857_v45 }
 0x19b   : > { %v916_v54 = vrot.slane %v915_v46, 2  ;;  %v944_v55 = vrot.slane %v943_v47, 2  ;;  %v869_v56 = vmul.f32 0.0625, %v836_v48  ;;  %v873_v57 = vmul.f32 0.0625, %v864_v49 }
 0x19c   : > { %v910_v58 = vadd.f32 %v909_v50, %v908_v42  ;;  %v938_v59 = vadd.f32 %v937_v51, %v936_v43  ;;  %v2052_v60 = vsub.f32 %v1991_v22, %v868_v52  ;;  %v2055_v61 = vsub.f32 %v1999_v30, %v868_v52 }
 0x19d   : > { %v917_v62 = vadd.f32 %v916_v54, %v915_v46  ;;  %v945_v63 = vadd.f32 %v944_v55, %v943_v47  ;;  %v2058_v6 = vsub.f32 %v1993_v23, %v872_v53  ;;  %v2061_v0 = vsub.f32 %v2001_v31, %v872_v53 }
 0x19e   : > { %v911_v4 = vrot.slane %v910_v58, 1  ;;  %v939_v1 = vrot.slane %v938_v59, 1  ;;  %v894_v2 = vmul.f32 %v2052_v60, %v2052_v60  ;;  %v896_v22 = vmul.f32 %v2055_v61, %v2055_v61 }
 0x19f   : > { %v918_v5 = vrot.slane %v917_v62, 1  ;;  %v946_v3 = vrot.slane %v945_v63, 1  ;;  %v902_v30 = vmul.f32 %v2058_v6, %v2058_v6  ;;  %v904_v23 = vmul.f32 %v2061_v0, %v2061_v0 }
 0x1a0   : > { %v912_v8 = vadd.f32 %v911_v4, %v910_v58  ;;  %v940_v9 = vadd.f32 %v939_v1, %v938_v59  ;;  %v920_v31 = vadd.f32 %v896_v22, %v894_v2  ;;  %v2072_v19 = vsub.f32 %v1995_v26, %v869_v56  ;;  %v2092_v59 = vpop.permute.xlu0 %1006  ;;  %v1074_v2 = vld [vmem:[%s2250_s4] sm:$0x3] }
 0x1a1   : > { %v919_v20 = vadd.f32 %v918_v5, %v917_v62  ;;  %v947_v21 = vadd.f32 %v946_v3, %v945_v63  ;;  %v948_v24 = vadd.f32 %v904_v23, %v902_v30  ;;  %v2075_v25 = vsub.f32 %v2007_v36, %v869_v56 }
 0x1a2   : > { %v962_v28 = vmul.f32 0.0625, %v912_v8  ;;  %v966_v29 = vmul.f32 0.0625, %v940_v9  ;;  %v921_v32 = vrot.slane %v920_v31, 4  ;;  %v895_v33 = vmul.f32 %v2072_v19, %v2072_v19 }
 0x1a3   : > { %v963_v34 = vmul.f32 0.0625, %v919_v20  ;;  %v967_v35 = vmul.f32 0.0625, %v947_v21  ;;  %v949_v38 = vrot.slane %v948_v24, 4  ;;  %v897_v39 = vmul.f32 %v2075_v25, %v2075_v25 }
 0x1a4   : > { %v970_v26 = vadd.f32 1e-05, %v962_v28  ;;  %v974_v14 = vadd.f32 1e-05, %v966_v29  ;;  %v922_v40 = vadd.f32 %v921_v32, %v920_v31  ;;  %v2082_v41 = vsub.f32 %v1997_v27, %v873_v57 }
 0x1a5   : > { %v971_v36 = vadd.f32 1e-05, %v963_v34  ;;  %v975_v42 = vadd.f32 1e-05, %v967_v35  ;;  %v950_v43 = vadd.f32 %v949_v38, %v948_v24  ;;  %v927_v44 = vadd.f32 %v897_v39, %v895_v33  ;;  %v2105_v38 = vpop.permute.xlu1 %1034  ;;  %v2107_v39 = vpop.permute.xlu0 %1011 }
 0x1a6   : > { %1431 = vrsqrt.f32 %v970_v26  ;;  %v923_v45 = vrot.slane %v922_v40, 2  ;;  %v2085_v46 = vsub.f32 %v2009_v37, %v873_v57  ;;  %v903_v47 = vmul.f32 %v2082_v41, %v2082_v41 }
 0x1a7   : > { %1433 = vrsqrt.f32 %v974_v14  ;;  %v951_v48 = vrot.slane %v950_v43, 2  ;;  %v928_v49 = vrot.slane %v927_v44, 4  ;;  %v1077_v51 = vshrl.u32 %v265_v11, 7 }
 0x1a8   : > { %1435 = vrsqrt.f32 %v971_v36  ;;  %v924_v50 = vadd.f32 %v923_v45, %v922_v40  ;;  %v905_v27 = vmul.f32 %v2085_v46, %v2085_v46 }
 0x1a9   : > { %1437 = vrsqrt.f32 %v975_v42  ;;  %v952_v52 = vadd.f32 %v951_v48, %v950_v43  ;;  %v929_v53 = vadd.f32 %v928_v49, %v927_v44  ;;  %v1078_v62 = vsub.s32 0, %v1077_v51 }
 0x1aa   : > { %v925_v54 = vrot.slane %v924_v50, 1  ;;  %v955_v55 = vadd.f32 %v905_v27, %v903_v47  ;;  %v1082_v63 = vsub.s32 1, %v1077_v51 }
 0x1ab   : > { %v953_v37 = vrot.slane %v952_v52, 1  ;;  %v930_v56 = vrot.slane %v929_v53, 2  ;;  %v2097_v9 = vrot.slane %v1074_v2, %v1078_v62 }
 0x1ac   : > { %v926_v57 = vadd.f32 %v925_v54, %v924_v50  ;;  %v956_v58 = vrot.slane %v955_v55, 4  ;;  %v2099_v31 = vrot.slane %v1074_v2, %v1082_v63 }
 0x1ad   : > { %v954_v4 = vadd.f32 %v953_v37, %v952_v52  ;;  %v931_v1 = vadd.f32 %v930_v56, %v929_v53  ;;  %v2126_v52 = vpop.permute.xlu1 %1039 }
 0x1ae   : > { %v964_v11 = vmul.f32 0.0625, %v926_v57  ;;  %v957_v22 = vadd.f32 %v956_v58, %v955_v55 }
 0x1af   : > { %v968_v5 = vmul.f32 0.0625, %v954_v4  ;;  %v932_v3 = vrot.slane %v931_v1, 1 }
 0x1b0   : > { %v1432_v30 = vpop.eup %1431  ;;  %v972_v23 = vadd.f32 1e-05, %v964_v11  ;;  %v958_v8 = vrot.slane %v957_v22, 2 }
 0x1b1   : > { %v1434_v20 = vpop.eup %1433  ;;  %v986_v21 = vmul.f32 %v1432_v30, %v2016_v7  ;;  %v988_v24 = vmul.f32 %v1432_v30, %v2018_v10  ;;  %v976_v28 = vadd.f32 1e-05, %v968_v5  ;;  %v933_v29 = vadd.f32 %v932_v3, %v931_v1 }
 0x1b2   : > { %v1436_v32 = vpop.eup %1435  ;;  %v994_v33 = vmul.f32 %v1434_v20, %v2021_v12  ;;  %v996_v34 = vmul.f32 %v1434_v20, %v2023_v13  ;;  %1439 = vrsqrt.f32 %v972_v23  ;;  %v959_v35 = vadd.f32 %v958_v8, %v957_v22 }
 0x1b3   : > { %v1438_v26 = vpop.eup %1437  ;;  %v987_v14 = vmul.f32 %v1436_v32, %v2026_v15  ;;  %v989_v7 = vmul.f32 %v1436_v32, %v2028_v16  ;;  %1441 = vrsqrt.f32 %v976_v28  ;;  %v965_v10 = vmul.f32 0.0625, %v933_v29 }
 0x1b4   : > { %v995_v40 = vmul.f32 %v1438_v26, %v2031_v17  ;;  %v997_v12 = vmul.f32 %v1438_v26, %v2033_v18  ;;  %v960_v36 = vrot.slane %v959_v35, 1  ;;  %v1014_v13 = vmul.f32 %v2092_v59, %v986_v21 }
 0x1b5   : > { %v973_v42 = vadd.f32 1e-05, %v965_v10  ;;  %v1015_v43 = vmul.f32 %v2092_v59, %v987_v14  ;;  %v1022_v44 = vmul.f32 %v2092_v59, %v994_v33  ;;  %v1016_v45 = vmul.f32 %v2107_v39, %v988_v24 }
 0x1b6   : > { %v961_v15 = vadd.f32 %v960_v36, %v959_v35  ;;  %v1023_v16 = vmul.f32 %v2092_v59, %v995_v40  ;;  %v1042_v47 = vadd.f32 %v2105_v38, %v1014_v13  ;;  %v1017_v17 = vmul.f32 %v2107_v39, %v989_v7 }
 0x1b7   : > { %1443 = vrsqrt.f32 %v973_v42  ;;  %v1043_v18 = vadd.f32 %v2105_v38, %v1015_v43  ;;  %v1050_v48 = vadd.f32 %v2105_v38, %v1022_v44  ;;  %v1024_v49 = vmul.f32 %v2107_v39, %v996_v34 }
 0x1b8   : > { %v969_v50 = vmul.f32 0.0625, %v961_v15  ;;  %v1051_v27 = vadd.f32 %v2105_v38, %v1023_v16  ;;  %vm1058_vm1 = vcmp.gt.f32.partialorder %v1042_v47, 0.0  ;;  %v1086_v51 = vmul.f32 %v2097_v9, %v1042_v47 }
 0x1b9   : > { %vm1059_vm2 = vcmp.gt.f32.partialorder %v1043_v18, 0.0  ;;  %vm1066_vm3 = vcmp.gt.f32.partialorder %v1050_v48, 0.0  ;;  %v1087_v53 = vmul.f32 %v2099_v31, %v1043_v18  ;;  %v1094_v54 = vmul.f32 %v2097_v9, %v1050_v48 }
 0x1ba   : > { %v977_v55 = vadd.f32 1e-05, %v969_v50  ;;  %vm1067_vm4 = vcmp.gt.f32.partialorder %v1051_v27, 0.0  ;;  %v1095_v37 = vmul.f32 %v2099_v31, %v1051_v27  ;;  %v1102_v56 = vsel %vm1058_vm1, %v1042_v47, %v1086_v51 }
 0x1bb   : > { %v1103_v57 = vsel %vm1059_vm2, %v1043_v18, %v1087_v53  ;;  %v1110_v58 = vsel %vm1066_vm3, %v1050_v48, %v1094_v54  ;;  %1118 = vst [vmem:[%s2131_s17] sm:$0xff] %v1102_v56  ;;  %v1025_v62 = vmul.f32 %v2107_v39, %v997_v12  ;;  %v1044_v63 = vadd.f32 %v2126_v52, %v1016_v45 }
 0x1bc   : > { %v1440_v4 = vpop.eup %1439  ;;  %1445 = vrsqrt.f32 %v977_v55  ;;  %v1111_v1 = vsel %vm1067_vm4, %v1051_v27, %v1095_v37  ;;  %1119 = vst [vmem:[%s2131_s17 + $0x8] sm:$0xff] %v1103_v57  ;;  %1126 = vst [vmem:[%s2131_s17 + $0x40] sm:$0xff] %v1110_v58  ;;  %v1045_v2 = vadd.f32 %v2126_v52, %v1017_v17  ;;  %v1052_v11 = vadd.f32 %v2126_v52, %v1024_v49 }
 0x1bd   : > { %v1442_v22 = vpop.eup %1441  ;;  %v990_v5 = vmul.f32 %v1440_v4, %v2052_v60  ;;  %v992_v3 = vmul.f32 %v1440_v4, %v2055_v61  ;;  %1127 = vst [vmem:[%s2131_s17 + $0x48] sm:$0xff] %v1111_v1  ;;  %v1053_v30 = vadd.f32 %v2126_v52, %v1025_v62  ;;  %vm1060_vm5 = vcmp.gt.f32.partialorder %v1044_v63, 0.0 }
 0x1be   : > { %v998_v23 = vmul.f32 %v1442_v22, %v2058_v6  ;;  %v1000_v8 = vmul.f32 %v1442_v22, %v2061_v0  ;;  %vm1061_vm6 = vcmp.gt.f32.partialorder %v1045_v2, 0.0  ;;  %vm1068_vm7 = vcmp.gt.f32.partialorder %v1052_v11, 0.0 }
 0x1bf   : > { %v1018_v20 = vmul.f32 %v2092_v59, %v990_v5  ;;  %v1020_v21 = vmul.f32 %v2107_v39, %v992_v3  ;;  %vm1069_vm8 = vcmp.gt.f32.partialorder %v1053_v30, 0.0  ;;  %v1088_v60 = vmul.f32 %v2097_v9, %v1044_v63 }
 0x1c0   : > { %v1026_v61 = vmul.f32 %v2092_v59, %v998_v23  ;;  %v1028_v24 = vmul.f32 %v2107_v39, %v1000_v8  ;;  %v1089_v28 = vmul.f32 %v2099_v31, %v1045_v2  ;;  %v1096_v6 = vmul.f32 %v2097_v9, %v1052_v11 }
 0x1c1   : > { %v1444_v29 = vpop.eup %1443  ;;  %v1046_v0 = vadd.f32 %v2105_v38, %v1018_v20  ;;  %v1048_v32 = vadd.f32 %v2126_v52, %v1020_v21  ;;  %v1097_v33 = vmul.f32 %v2099_v31, %v1053_v30  ;;  %v1104_v34 = vsel %vm1060_vm5, %v1044_v63, %v1088_v60 }
 0x1c2   : > { %v991_v35 = vmul.f32 %v1444_v29, %v2072_v19  ;;  %v993_v26 = vmul.f32 %v1444_v29, %v2075_v25  ;;  %v1054_v14 = vadd.f32 %v2105_v38, %v1026_v61  ;;  %v1056_v7 = vadd.f32 %v2126_v52, %v1028_v24  ;;  %1120 = vst [vmem:[%s2131_s17 + $0x10] sm:$0xff] %v1104_v34 }
 0x1c3   : > { %vm1062_vm9 = vcmp.gt.f32.partialorder %v1046_v0, 0.0  ;;  %v1090_v10 = vmul.f32 %v2097_v9, %v1046_v0  ;;  %vm1064_vm10 = vcmp.gt.f32.partialorder %v1048_v32, 0.0  ;;  %v1092_v40 = vmul.f32 %v2097_v9, %v1048_v32 }
 0x1c4   : > { %v1019_v12 = vmul.f32 %v2092_v59, %v991_v35  ;;  %vm1070_vm11 = vcmp.gt.f32.partialorder %v1054_v14, 0.0  ;;  %v1098_v19 = vmul.f32 %v2097_v9, %v1054_v14  ;;  %v1021_v25 = vmul.f32 %v2107_v39, %v993_v26 }
 0x1c5   : > { %v1106_v36 = vsel %vm1062_vm9, %v1046_v0, %v1090_v10  ;;  %vm1072_vm12 = vcmp.gt.f32.partialorder %v1056_v7, 0.0  ;;  %v1100_v13 = vmul.f32 %v2097_v9, %v1056_v7  ;;  %v1105_v42 = vsel %vm1061_vm6, %v1045_v2, %v1089_v28 }
 0x1c6   : > { %v1446_v43 = vpop.eup %1445  ;;  %v1047_v44 = vadd.f32 %v2105_v38, %v1019_v12  ;;  %v1114_v45 = vsel %vm1070_vm11, %v1054_v14, %v1098_v19  ;;  %1122 = vst [vmem:[%s2131_s17 + $0x20] sm:$0xff] %v1106_v36  ;;  %v1049_v15 = vadd.f32 %v2126_v52, %v1021_v25  ;;  %v1108_v16 = vsel %vm1064_vm10, %v1048_v32, %v1092_v40 }
 0x1c7   : > { %1121 = vst [vmem:[%s2131_s17 + $0x18] sm:$0xff] %v1105_v42  ;;  %v999_v47 = vmul.f32 %v1446_v43, %v2082_v41  ;;  %v1001_v17 = vmul.f32 %v1446_v43, %v2085_v46  ;;  %1130 = vst [vmem:[%s2131_s17 + $0x60] sm:$0xff] %v1114_v45  ;;  %v1112_v9 = vsel %vm1068_vm7, %v1052_v11, %v1096_v6 }
 0x1c8   : > { %v1113_v18 = vsel %vm1069_vm8, %v1053_v30, %v1097_v33  ;;  %1124 = vst [vmem:[%s2131_s17 + $0x30] sm:$0xff] %v1108_v16  ;;  %vm1063_vm13 = vcmp.gt.f32.partialorder %v1047_v44, 0.0  ;;  %v1091_v48 = vmul.f32 %v2099_v31, %v1047_v44  ;;  %vm1065_vm14 = vcmp.gt.f32.partialorder %v1049_v15, 0.0  ;;  %1128 = vst [vmem:[%s2131_s17 + $0x50] sm:$0xff] %v1112_v9 }
 0x1c9   : > { %v1093_v49 = vmul.f32 %v2099_v31, %v1049_v15  ;;  %1129 = vst [vmem:[%s2131_s17 + $0x58] sm:$0xff] %v1113_v18  ;;  %v1027_v41 = vmul.f32 %v2092_v59, %v999_v47  ;;  %v1029_v46 = vmul.f32 %v2107_v39, %v1001_v17  ;;  %v1116_v50 = vsel %vm1072_vm12, %v1056_v7, %v1100_v13 }
 0x1ca   : > { %v1107_v27 = vsel %vm1063_vm13, %v1047_v44, %v1091_v48  ;;  %1132 = vst [vmem:[%s2131_s17 + $0x70] sm:$0xff] %v1116_v50 }
 0x1cb   : > { %v1109_v51 = vsel %vm1065_vm14, %v1049_v15, %v1093_v49  ;;  %v1055_v53 = vadd.f32 %v2105_v38, %v1027_v41  ;;  %1123 = vst [vmem:[%s2131_s17 + $0x28] sm:$0xff] %v1107_v27  ;;  %v1057_v54 = vadd.f32 %v2126_v52, %v1029_v46 }
 0x1cc   : > { %1125 = vst [vmem:[%s2131_s17 + $0x38] sm:$0xff] %v1109_v51 }
 0x1cd   : > { %vm1071_vm15 = vcmp.gt.f32.partialorder %v1055_v53, 0.0  ;;  %v1099_v59 = vmul.f32 %v2099_v31, %v1055_v53  ;;  %vm1073_vm0 = vcmp.gt.f32.partialorder %v1057_v54, 0.0  ;;  %v1101_v39 = vmul.f32 %v2099_v31, %v1057_v54 }
 0x1cf   : > { %v1115_v38 = vsel %vm1071_vm15, %v1055_v53, %v1099_v59  ;;  %v1117_v55 = vsel %vm1073_vm0, %v1057_v54, %v1101_v39 }
 0x1d0   : > { %1131 = vst [vmem:[%s2131_s17 + $0x68] sm:$0xff] %v1115_v38  ;;  %1133 = vst [vmem:[%s2131_s17 + $0x78] sm:$0xff] %v1117_v55 }
 0x1d1   : > { %1518 = shalt.err (!%p1515_p7)
}
 0x1d2   : > { %s1519_s10 = scalar_lea.hbm %s2198_s26, 2048  ;;  %s1523_s6 = scalar_lea.hbm %s2251_s5, 4096 }
 0x1d3   : > { %p1520_p9 = scmp.ne.s32.totalorder %s2198_s26, %s1519_s10  ;;  %p1524_p5 = scmp.lt.u32.totalorder %s2198_s26, %s2251_s5 }
 0x1d4   : > { %p1525_p11 = scmp.lt.u32.totalorder %s1523_s6, %s1519_s10  ;;  %p1527_p4 = scmp.lt.u32.totalorder %s1519_s10, %s2198_s26 }
 0x1d5   : > { %p1521_p2 = pnand %p1520_p9, %p1708_p12 }
 0x1d6   : > { %p1526_p1 = por %p1525_p11, %p1524_p5 }
 0x1d7   : > { %p1522_p0 = pneg %p1521_p2 }
 0x1d8   : > { %p1528_p6 = por %p1527_p4, %p1526_p1 }
 0x1da   : > { %p1529_p8 = pnand %p1528_p6, %p1522_p0 }
 0x1dc   : > { %1532 = shalt.err (!%p1529_p8)
}
 0x1dd   : > { %s1585_s27 = smov 256   ;;  %s1586_s29 = smov 16  }
 0x1de   : > { %1323 = dma.vmem_to_hbm [thread:$0]  (%p1708_p12), %s2200_s11, 2048, %s2198_s26, %s1135_s22, %s1585_s27, %s1585_s27, %s1586_s29  }
 0x1df PF: > { %s1164_s24 = sand.u32 1, %s1563_s18   ;;  %p2268_p10 = scmp.ne.s32.totalorder %s2256_s25, 0 }
 0x1e0   : > { %p2269_p13 = scmp.ge.s32.totalorder %s1575_s21, 2  ;;  %s1165_s14 = scalar_lea.sflag [#allocation5], %s1164_s24 }
 0x1e2   : > { %p1334_p3 = pnand %p2269_p13, %p2268_p10 }
 0x1e4   : > { %1558 = dma.done.wait (!%p1334_p3), %s1165_s14, 2048  }
 0x1e5   : > { %1560 = vsyncadd (!%p1334_p3), %s1165_s14, 4294965248  ;;  %p19_p7 = scmp.ge.s32.totalorder %s1673_s30, 4   ;;  %s2270_s18 = smov %s1567_s19 }
 0x1e6   : > { %s2271_s19 = smov %s1571_s20  ;;  %s2272_s20 = smov %s1704_s8 }
 0x1e7   : > { %s2273_s21 = smov %s1673_s30  ;;  %21 = sbr.rel (!%p19_p7) target bundleno = 6 (0x6), region = 152 }
 0x1ee   :  { %1170 = vsyncpa [#allocation4], 1 }
 0x1ef   :  { %1172 = vsyncpa [#allocation4 + $0x1], 1 }
 0x1f0   :  { %1173 = vsyncpa [#allocation7], 1 }
 0x1f1   :  { %1174 = vsyncpa [#allocation5], 1 }
 0x1f2   :  { %1176 = vsyncpa [#allocation5 + $0x1], 1 }

</bundles_post_ra>
